<compile_context>
chip_gen: v6e
topology: v6e:2x2x1
jax: 0.10.0
libtpu: 0.0.40
codegen_flags: <defaults>
</compile_context>

<pallas_src>
import functools

import jax
import jax.numpy as jnp
from jax.experimental import pallas as pl
from jax.experimental.pallas import tpu as pltpu


def _round_up(x, m):
    return ((x + m - 1) // m) * m


def _textcnn_kernel(k_max, emb_ref, wm_ref, cb_ref, mask_ref, fcw_ref, fcb_ref,
                    out_ref):
    """Per-tap conv matmuls + bias + ReLU + masked max-pool + padded FC (one batch tile)."""
    TB, S_pad, E = emb_ref.shape
    S = S_pad - (k_max - 1)                 # conv positions evaluated for every branch
    nKp = wm_ref.shape[-1]

    # Every conv branch, one tap at a time, accumulated into a single f32 MXU
    # accumulator: (TB*S, E) @ (E, nKp).  No im2col slab / concat is materialized.
    acc = jnp.dot(emb_ref[:, pl.ds(0, S), :].reshape(TB * S, E),
                  wm_ref[pl.ds(0, E), :], preferred_element_type=jnp.float32)
    for i in range(1, k_max):
        acc += jnp.dot(emb_ref[:, pl.ds(i, S), :].reshape(TB * S, E),
                       wm_ref[pl.ds(i * E, E), :],
                       preferred_element_type=jnp.float32)

    # bias + ReLU epilogue in f32 (single vreg-wide VPU ops).
    act = jnp.maximum(acc.reshape(TB, S, nKp) + cb_ref[...], 0.0)

    # Only the last k_max-1 positions can be out-of-range for any conv branch.
    # Zeroing them is safe ONLY because ReLU makes every activation >= 0, so a zeroed
    # invalid position can never win the max (re-check if the activation changes).
    tail = k_max - 1
    if tail > 0:
        head = S - tail
        pooled = jnp.maximum(
            jnp.max(act[:, :head, :], axis=1),
            jnp.max(act[:, head:, :] * mask_ref[...], axis=1))     # (TB, nKp)
    else:
        pooled = jnp.max(act, axis=1)

    # TODO(synk): dropout has p=0.0 in this config (identity at inference); omitted.
    # FC with zero rows for padded filter columns and zero columns for padded classes,
    # so the (TB, C_pad) store is lane-dense (unmasked vst).
    out_ref[...] = (jnp.dot(pooled, fcw_ref[...],
                            preferred_element_type=jnp.float32) + fcb_ref[...])


def textcnn_forward(token_ids, params, kernel_sizes, *, block_b=128,
                    compute_dtype=jnp.bfloat16):
    kernel_sizes = tuple(int(k) for k in kernel_sizes)
    k_max = max(kernel_sizes)
    n = len(kernel_sizes)
    conv_w, conv_b = params["conv_w"], params["conv_b"]
    fc_w, fc_b = params["fc_w"], params["fc_b"]
    K = conv_w[0].shape[-1]
    E = params["emb"].shape[-1]
    C = fc_w.shape[-1]
    B, S = token_ids.shape

    nK = n * K
    nKp = _round_up(nK, 128)          # lane-dense merged-filter axis
    C_pad = _round_up(C, 128)         # lane-dense output axis

    # ---- tiny host-side weight re-layout: merged per-tap conv weight / bias ----
    wm = jnp.zeros((k_max, E, nKp), jnp.float32)
    bm = jnp.zeros((1, nKp), jnp.float32)
    for idx, k in enumerate(kernel_sizes):
        wm = wm.at[:k, :, idx * K:(idx + 1) * K].set(conv_w[idx])
        bm = bm.at[:, idx * K:(idx + 1) * K].set(conv_b[idx])
    wm = wm.reshape(k_max * E, nKp).astype(compute_dtype)

    # FC weight/bias padded: zero rows for padded filter columns, zero columns for
    # padded classes (no concat inside the kernel; lane-dense output store).
    fcw_p = jnp.zeros((nKp, C_pad), jnp.float32).at[:nK, :C].set(fc_w)
    fcb_p = jnp.zeros((1, C_pad), jnp.float32).at[:, :C].set(fc_b)

    # Tail validity mask: position p is valid for conv idx iff p < S - k_idx + 1, and
    # only the last k_max-1 positions can ever be invalid.
    tail = k_max - 1
    mask_rows = max(tail, 1)
    valid_len = jnp.zeros((nKp,), jnp.int32)
    for idx, k in enumerate(kernel_sizes):
        valid_len = valid_len.at[idx * K:(idx + 1) * K].set(S - k + 1)
    pos = jnp.arange(S - mask_rows, S)
    mask = (pos[:, None] < valid_len[None, :]).astype(compute_dtype)  # (mask_rows, nKp)

    # ---- embedding gather stays in plain JAX, but in compute_dtype so no f32
    # (B, S_pad, E) activation slab ever round-trips HBM ----
    # TODO(synk): fuse the gather into the kernel (scalar-prefetch token ids + DMA row
    # gather) so the activation slab never touches HBM at all.
    emb = jnp.take(params["emb"].astype(compute_dtype), token_ids, axis=0)  # (B,S,E)
    emb = jnp.pad(emb, ((0, 0), (0, k_max - 1), (0, 0)))                    # (B,S_pad,E)
    S_pad = S + k_max - 1

    # ---- batch tiling: big tiles amortize the ~0.35us per-grid-step overhead; keep
    # >= 2 grid steps when the batch allows so v7x's two TensorCores both get work.
    # (~100 KB of VMEM per batch row in-kernel -> block_b=128 stays well under the
    # 64 MiB explicit limit below on every generation.)
    block_b = _round_up(max(int(block_b), 8), 8)
    if B > block_b:
        TB = block_b
    elif B > 8:
        TB = _round_up(pl.cdiv(B, 2), 8)
    else:
        TB = B
    B_pad = pl.cdiv(B, TB) * TB
    if B_pad != B:
        emb = jnp.pad(emb, ((0, B_pad - B), (0, 0), (0, 0)))

    out = pl.pallas_call(
        functools.partial(_textcnn_kernel, k_max),
        out_shape=jax.ShapeDtypeStruct((B_pad, C_pad), jnp.float32),
        grid=(B_pad // TB,),
        in_specs=[
            pl.BlockSpec((TB, S_pad, E), lambda i: (i, 0, 0)),     # activation tile
            pl.BlockSpec((k_max * E, nKp), lambda i: (0, 0)),      # merged conv weight
            pl.BlockSpec((1, nKp), lambda i: (0, 0)),              # merged conv bias
            pl.BlockSpec((mask_rows, nKp), lambda i: (0, 0)),      # tail validity mask
            pl.BlockSpec((nKp, C_pad), lambda i: (0, 0)),          # fc weight (padded)
            pl.BlockSpec((1, C_pad), lambda i: (0, 0)),            # fc bias (padded)
        ],
        out_specs=pl.BlockSpec((TB, C_pad), lambda i: (i, 0)),
        compiler_params=pltpu.CompilerParams(
            dimension_semantics=("parallel",),
            vmem_limit_bytes=64 * 1024 * 1024),
    )(emb, wm, bm, mask, fcw_p, fcb_p)
    return out[:B, :C]


def textcnn_reference(token_ids, params, kernel_sizes):
    """Pure-JAX f32 reference mirroring the PyTorch forward."""
    emb = jnp.take(params["emb"], token_ids, axis=0).astype(jnp.float32)  # (B, S, E)
    B, S, E = emb.shape
    feats = []
    for idx, k in enumerate(kernel_sizes):
        w = params["conv_w"][idx]                   # (k, E, K)
        b = params["conv_b"][idx]                   # (1, K)
        L = S - k + 1
        acc = jnp.zeros((B, L, w.shape[-1]), jnp.float32)
        for i in range(k):
            acc = acc + jnp.einsum("bse,ek->bsk", emb[:, i:i + L, :], w[i])
        act = jax.nn.relu(acc + b)
        feats.append(jnp.max(act, axis=1))
    f = jnp.concatenate(feats, axis=1)
    return f @ params["fc_w"] + params["fc_b"]


def make_params(key, vocab_size, emb_size, num_kernels, kernel_sizes, num_classes,
                padding_index=0):
    keys = jax.random.split(key, 2 + 2 * len(kernel_sizes) + 2)
    emb = 0.1 * jax.random.normal(keys[0], (vocab_size, emb_size), jnp.float32)
    emb = emb.at[padding_index].set(0.0)            # padding_idx row is zeroed

    conv_w, conv_b = [], []
    for i, k in enumerate(kernel_sizes):
        conv_w.append(
            0.1 * jax.random.normal(keys[1 + 2 * i], (k, emb_size, num_kernels),
                                    jnp.float32))
        conv_b.append(
            0.1 * jax.random.normal(keys[2 + 2 * i], (1, num_kernels), jnp.float32))

    feat = num_kernels * len(kernel_sizes)
    fc_w = 0.1 * jax.random.normal(keys[-2], (feat, num_classes), jnp.float32)
    fc_b = 0.1 * jax.random.normal(keys[-1], (1, num_classes), jnp.float32)
    return {"emb": emb, "conv_w": conv_w, "conv_b": conv_b, "fc_w": fc_w, "fc_b": fc_b}


if __name__ == "__main__":
    # Small, module-consistent shapes (emb_size=128 is the module default).
    vocab_size = 64
    emb_size = 128
    num_kernels = 32
    kernel_sizes = (2, 3, 4)
    num_classes = 8
    batch = 16          # -> TB=8, grid=2 (exercises the multi-tile / megacore path)
    seq_len = 32

    key = jax.random.PRNGKey(0)
    k_params, k_tokens = jax.random.split(key)

    params = make_params(k_params, vocab_size, emb_size, num_kernels, kernel_sizes,
                         num_classes)
    token_ids = jax.random.randint(k_tokens, (batch, seq_len), 0, vocab_size,
                                   dtype=jnp.int32)

    ref = textcnn_reference(token_ids, params, kernel_sizes)

    # Exact f32 path.
    out_f32 = jax.block_until_ready(
        textcnn_forward(token_ids, params, kernel_sizes,
                        compute_dtype=jnp.float32))
    assert out_f32.shape == (batch, num_classes)
    assert jnp.allclose(out_f32, ref, atol=5e-3, rtol=5e-3), "f32 mismatch vs reference"

    # bf16-operand fast path (f32 accumulation / epilogue), looser tolerance.
    out_bf16 = jax.block_until_ready(
        textcnn_forward(token_ids, params, kernel_sizes,
                        compute_dtype=jnp.bfloat16))
    assert out_bf16.shape == (batch, num_classes)
    assert jnp.allclose(out_bf16, ref, atol=3e-2, rtol=3e-2), "bf16 mismatch vs reference"

    print("KERNEL_OK")
</pallas_src>

<mosaic_0001>
module attributes {stable_mosaic.version = 11 : i64} {
  func.func @_textcnn_kernel(%arg0: i32, %arg1: memref<8x35x128xf32, #tpu.memory_space<vmem>>, %arg2: memref<512x128xf32, #tpu.memory_space<vmem>>, %arg3: memref<1x128xf32, #tpu.memory_space<vmem>>, %arg4: memref<3x128xf32, #tpu.memory_space<vmem>>, %arg5: memref<128x128xf32, #tpu.memory_space<vmem>>, %arg6: memref<1x128xf32, #tpu.memory_space<vmem>>, %arg7: memref<8x128xf32, #tpu.memory_space<vmem>>) attributes {dimension_semantics = [#tpu.dimension_semantics<parallel>], iteration_bounds = array<i64: 2>, scalar_prefetch = 0 : i64, scratch_operands = 0 : i64, tpu.core_type = #tpu.core_type<tc>, window_params = [{transform_indices = @transform_0, window_bounds = array<i64: 8, 35, 128>}, {pipeline_mode = #tpu.pipeline_mode<synchronous>, transform_indices = @transform_1, window_bounds = array<i64: 512, 128>}, {pipeline_mode = #tpu.pipeline_mode<synchronous>, transform_indices = @transform_2, window_bounds = array<i64: 1, 128>}, {pipeline_mode = #tpu.pipeline_mode<synchronous>, transform_indices = @transform_3, window_bounds = array<i64: 3, 128>}, {pipeline_mode = #tpu.pipeline_mode<synchronous>, transform_indices = @transform_4, window_bounds = array<i64: 128, 128>}, {pipeline_mode = #tpu.pipeline_mode<synchronous>, transform_indices = @transform_5, window_bounds = array<i64: 1, 128>}, {transform_indices = @transform_6, window_bounds = array<i64: 8, 128>}]} {
    %c0 = arith.constant 0 : index
    %c0_0 = arith.constant 0 : index
    %c0_1 = arith.constant 0 : index
    %0 = vector.load %arg1[%c0, %c0_0, %c0_1] : memref<8x35x128xf32, #tpu.memory_space<vmem>>, vector<8x32x128xf32>
    %1 = vector.shape_cast %0 : vector<8x32x128xf32> to vector<256x128xf32>
    %c0_2 = arith.constant 0 : index
    %c0_3 = arith.constant 0 : index
    %2 = vector.load %arg2[%c0_2, %c0_3] : memref<512x128xf32, #tpu.memory_space<vmem>>, vector<128x128xf32>
    %cst = arith.constant dense<0.000000e+00> : vector<256x128xf32>
    %3 = tpu.matmul %1, %2, %cst {dimension_numbers = #tpu.dot_dimension_numbers<[1], [0], [0], [1], [0, 0, 1, 1], [], []>} : vector<256x128xf32>, vector<128x128xf32>, vector<256x128xf32> -> vector<256x128xf32>
    %c0_4 = arith.constant 0 : index
    %c1 = arith.constant 1 : index
    %c0_5 = arith.constant 0 : index
    %4 = vector.load %arg1[%c0_4, %c1, %c0_5] : memref<8x35x128xf32, #tpu.memory_space<vmem>>, vector<8x32x128xf32>
    %5 = vector.shape_cast %4 : vector<8x32x128xf32> to vector<256x128xf32>
    %c128 = arith.constant 128 : index
    %c0_6 = arith.constant 0 : index
    %6 = vector.load %arg2[%c128, %c0_6] : memref<512x128xf32, #tpu.memory_space<vmem>>, vector<128x128xf32>
    %cst_7 = arith.constant dense<0.000000e+00> : vector<256x128xf32>
    %7 = tpu.matmul %5, %6, %cst_7 {dimension_numbers = #tpu.dot_dimension_numbers<[1], [0], [0], [1], [0, 0, 1, 1], [], []>} : vector<256x128xf32>, vector<128x128xf32>, vector<256x128xf32> -> vector<256x128xf32>
    %8 = arith.addf %3, %7 : vector<256x128xf32>
    %c0_8 = arith.constant 0 : index
    %c2 = arith.constant 2 : index
    %c0_9 = arith.constant 0 : index
    %9 = vector.load %arg1[%c0_8, %c2, %c0_9] : memref<8x35x128xf32, #tpu.memory_space<vmem>>, vector<8x32x128xf32>
    %10 = vector.shape_cast %9 : vector<8x32x128xf32> to vector<256x128xf32>
    %c256 = arith.constant 256 : index
    %c0_10 = arith.constant 0 : index
    %11 = vector.load %arg2[%c256, %c0_10] : memref<512x128xf32, #tpu.memory_space<vmem>>, vector<128x128xf32>
    %cst_11 = arith.constant dense<0.000000e+00> : vector<256x128xf32>
    %12 = tpu.matmul %10, %11, %cst_11 {dimension_numbers = #tpu.dot_dimension_numbers<[1], [0], [0], [1], [0, 0, 1, 1], [], []>} : vector<256x128xf32>, vector<128x128xf32>, vector<256x128xf32> -> vector<256x128xf32>
    %13 = arith.addf %8, %12 : vector<256x128xf32>
    %c0_12 = arith.constant 0 : index
    %c3 = arith.constant 3 : index
    %c0_13 = arith.constant 0 : index
    %14 = vector.load %arg1[%c0_12, %c3, %c0_13] : memref<8x35x128xf32, #tpu.memory_space<vmem>>, vector<8x32x128xf32>
    %15 = vector.shape_cast %14 : vector<8x32x128xf32> to vector<256x128xf32>
    %c384 = arith.constant 384 : index
    %c0_14 = arith.constant 0 : index
    %16 = vector.load %arg2[%c384, %c0_14] : memref<512x128xf32, #tpu.memory_space<vmem>>, vector<128x128xf32>
    %cst_15 = arith.constant dense<0.000000e+00> : vector<256x128xf32>
    %17 = tpu.matmul %15, %16, %cst_15 {dimension_numbers = #tpu.dot_dimension_numbers<[1], [0], [0], [1], [0, 0, 1, 1], [], []>} : vector<256x128xf32>, vector<128x128xf32>, vector<256x128xf32> -> vector<256x128xf32>
    %18 = arith.addf %13, %17 : vector<256x128xf32>
    %19 = vector.shape_cast %18 : vector<256x128xf32> to vector<8x32x128xf32>
    %c0_16 = arith.constant 0 : index
    %c0_17 = arith.constant 0 : index
    %20 = vector.load %arg3[%c0_16, %c0_17] : memref<1x128xf32, #tpu.memory_space<vmem>>, vector<1x128xf32>
    %21 = vector.shape_cast %20 : vector<1x128xf32> to vector<1x1x128xf32>
    %22 = vector.broadcast %21 : vector<1x1x128xf32> to vector<8x32x128xf32>
    %23 = arith.addf %19, %22 : vector<8x32x128xf32>
    %cst_18 = arith.constant 0.000000e+00 : f32
    %24 = vector.broadcast %cst_18 : f32 to vector<8x32x128xf32>
    %25 = arith.maximumf %23, %24 : vector<8x32x128xf32>
    %26 = vector.extract_strided_slice %25 {offsets = [0, 0, 0], sizes = [8, 29, 128], strides = [1, 1, 1]} : vector<8x32x128xf32> to vector<8x29x128xf32>
    %cst_19 = arith.constant dense<0xFF800000> : vector<8x128xf32>
    %27 = vector.multi_reduction <maximumf>, %26, %cst_19 [1] : vector<8x29x128xf32> to vector<8x128xf32>
    %28 = vector.extract_strided_slice %25 {offsets = [0, 29, 0], sizes = [8, 3, 128], strides = [1, 1, 1]} : vector<8x32x128xf32> to vector<8x3x128xf32>
    %c0_20 = arith.constant 0 : index
    %c0_21 = arith.constant 0 : index
    %29 = vector.load %arg4[%c0_20, %c0_21] : memref<3x128xf32, #tpu.memory_space<vmem>>, vector<3x128xf32>
    %30 = vector.shape_cast %29 : vector<3x128xf32> to vector<1x3x128xf32>
    %31 = vector.broadcast %30 : vector<1x3x128xf32> to vector<8x3x128xf32>
    %32 = arith.mulf %28, %31 : vector<8x3x128xf32>
    %cst_22 = arith.constant dense<0xFF800000> : vector<8x128xf32>
    %33 = vector.multi_reduction <maximumf>, %32, %cst_22 [1] : vector<8x3x128xf32> to vector<8x128xf32>
    %34 = arith.maximumf %27, %33 : vector<8x128xf32>
    %c0_23 = arith.constant 0 : index
    %c0_24 = arith.constant 0 : index
    %35 = vector.load %arg5[%c0_23, %c0_24] : memref<128x128xf32, #tpu.memory_space<vmem>>, vector<128x128xf32>
    %cst_25 = arith.constant dense<0.000000e+00> : vector<8x128xf32>
    %36 = tpu.matmul %34, %35, %cst_25 {dimension_numbers = #tpu.dot_dimension_numbers<[1], [0], [0], [1], [0, 0, 1, 1], [], []>} : vector<8x128xf32>, vector<128x128xf32>, vector<8x128xf32> -> vector<8x128xf32>
    %c0_26 = arith.constant 0 : index
    %c0_27 = arith.constant 0 : index
    %37 = vector.load %arg6[%c0_26, %c0_27] : memref<1x128xf32, #tpu.memory_space<vmem>>, vector<1x128xf32>
    %38 = vector.broadcast %37 : vector<1x128xf32> to vector<8x128xf32>
    %39 = arith.addf %36, %38 : vector<8x128xf32>
    %c0_28 = arith.constant 0 : index
    %c0_29 = arith.constant 0 : index
    %40 = vector.load %arg7[%c0_28, %c0_29] : memref<8x128xf32, #tpu.memory_space<vmem>>, vector<8x128xf32>
    tpu.vector_store %arg7[%c0_28, %c0_29], %39 {strides = array<i32>} : memref<8x128xf32, #tpu.memory_space<vmem>>, vector<8x128xf32>,
    return
  }
  func.func @transform_0(%arg0: i32) -> (i32, i32, i32) {
    %c0_i32 = arith.constant 0 : i32
    %c0_i32_0 = arith.constant 0 : i32
    %c0_i32_1 = arith.constant 0 : i32
    return %arg0, %c0_i32, %c0_i32_0 : i32, i32, i32
  }
  func.func @transform_1(%arg0: i32) -> (i32, i32) {
    %c0_i32 = arith.constant 0 : i32
    %c0_i32_0 = arith.constant 0 : i32
    %c0_i32_1 = arith.constant 0 : i32
    return %c0_i32, %c0_i32_0 : i32, i32
  }
  func.func @transform_2(%arg0: i32) -> (i32, i32) {
    %c0_i32 = arith.constant 0 : i32
    %c0_i32_0 = arith.constant 0 : i32
    %c0_i32_1 = arith.constant 0 : i32
    return %c0_i32, %c0_i32_0 : i32, i32
  }
  func.func @transform_3(%arg0: i32) -> (i32, i32) {
    %c0_i32 = arith.constant 0 : i32
    %c0_i32_0 = arith.constant 0 : i32
    %c0_i32_1 = arith.constant 0 : i32
    return %c0_i32, %c0_i32_0 : i32, i32
  }
  func.func @transform_4(%arg0: i32) -> (i32, i32) {
    %c0_i32 = arith.constant 0 : i32
    %c0_i32_0 = arith.constant 0 : i32
    %c0_i32_1 = arith.constant 0 : i32
    return %c0_i32, %c0_i32_0 : i32, i32
  }
  func.func @transform_5(%arg0: i32) -> (i32, i32) {
    %c0_i32 = arith.constant 0 : i32
    %c0_i32_0 = arith.constant 0 : i32
    %c0_i32_1 = arith.constant 0 : i32
    return %c0_i32, %c0_i32_0 : i32, i32
  }
  func.func @transform_6(%arg0: i32) -> (i32, i32) {
    %c0_i32 = arith.constant 0 : i32
    %c0_i32_0 = arith.constant 0 : i32
    return %arg0, %c0_i32 : i32, i32
  }
}

</mosaic_0001>

<bundles_post_ra>
// kernel: tpu_custom_call.1
= control target key start
LH: loop header
LB: loop body
LE: loop exit
PB: predicated region body
PF: predicated region fallthrough
CT: control target
= control target key end

     0   :  { %11 = vsyncpa [#allocation3], 0  ;;  %s3242_s0 = inlined_call_operand.vmem [shape: f32[16,35,128], index: 0, kind: input, shape index: {}]   ;;  %s3243_s1 = inlined_call_operand.vmem [shape: f32[512,128], index: 1, kind: input, shape index: {}]   ;;  %s3244_s2 = inlined_call_operand.vmem [shape: f32[1,128], index: 2, kind: input, shape index: {}]   ;;  %s3245_s3 = inlined_call_operand.vmem [shape: f32[3,128], index: 3, kind: input, shape index: {}]   ;;  %s3246_s4 = inlined_call_operand.vmem [shape: f32[128,128], index: 4, kind: input, shape index: {}]   ;;  %s3247_s5 = inlined_call_operand.vmem [shape: f32[1,128], index: 5, kind: input, shape index: {}]   ;;  %s3248_s6 = inlined_call_operand.hbm [shape: f32[16,128], index: 6, kind: output, shape index: {}]  }
   0x1   :  { %13 = vsyncpa [#allocation3 + $0x1], 0  ;;  %s2549_s21 = smov 0   ;;  %s2551_s22 = smov 0  }
   0x2   :  { %s2553_s23 = smov 0   ;;  %s2555_s24 = smov 0  }
   0x3 LB: > { %s2570_s25 = sadd.s32 4294967295, %s2509_s24   ;;  %s1830_s26 = sadd.s32 4294967294, %s2509_s24   ;;  %s2509_s24 = sphi %s2555_s24, %s3254_s24   ;;  %s2505_s23 = sphi %s2553_s23, %s3253_s23   ;;  %s2501_s22 = sphi %s2551_s22, %s3252_s22   ;;  %s2497_s21 = sphi %s2549_s21, %s3251_s21  }
   0x4   : > { %s2574_s27 = sadd.s32 1, %s2509_s24   ;;  %s157_s28 = sadd.s32 1, %s2505_s23 }
   0x5   : > { %s154_s29 = ssub.s32 %s2509_s24, %s2574_s27  ;;  %p167_p0 = scmp.ne.s32.totalorder %s2505_s23, %s2501_s22 }
   0x6   : > { %p155_p1 = scmp.eq.s32.totalorder %s154_s29, 0  ;;  %p168_p2 = scmp.eq.s32.totalorder %s2570_s25, 1 }
   0x7   : > { %p173_p3 = scmp.ne.s32.totalorder %s2501_s22, %s2497_s21  ;;  %p174_p4 = scmp.eq.s32.totalorder %s1830_s26, 1 }
   0x8   : > { %s2585_s30 = scalar_select %p155_p1, %s2505_s23, %s157_s28  }
   0x9   : > { %p2587_p5 = por %p168_p2, %p167_p0  ;;  %p2591_p6 = por %p174_p4, %p173_p3 }
   0xa   : > { %p1833_p7 = scmp.ge.s32.totalorder %s2509_s24, 1  ;;  %p217_p8 = scmp.lt.s32.totalorder %s2509_s24, 3 }
   0xc   : > { %p218_p9 = pnand %p1833_p7, %p217_p8 }
   0xd   : > { %s1835_s28 = sshll.u32 (!%p218_p9), %s2570_s25, 3  ;;  %s1840_s29 = sshll.u32 (!%p218_p9), %s2570_s25, 7 }
   0xe   : > { %221 = sbr.rel (%p218_p9) target bundleno = 613 (0x265), region = 44  ;;  %p249_p10 = scmp.lt.s32.totalorder (!%p218_p9), %s1835_s28, 15 }
   0xf   : > { %s3207_s12 = scalar_lea.hbm (!%p218_p9), %s3248_s6, %s1840_s29  ;;  %s2513_s16 = smov (!%p218_p9), [#allocation2]  }
  0x10   : > { %s2453_s25 = sshll.u32 (!%p218_p9), %s2513_s16, 4  ;;  %s2454_s25 = int_to_ptr.vmem [resolvable:$false] %s2453_s25 }
  0x11   : > { %s2455_s17 = scalar_lea.vmem (!%p218_p9), %s2454_s25, 256 }
  0x13   : > { %v350_v0 = vld [vmem:[%s3243_s1 + $0xf8] sm:$0xff]  ;;  %v349_v2 = vld [vmem:[%s3243_s1 + $0xf0] sm:$0xff]  ;;  %v348_v4 = vld [vmem:[%s3243_s1 + $0xe8] sm:$0xff]  ;;  %s3256_s28 = smov (!%p249_p10, %s1835_s28), 15  ;;  %vm2512_vm0 = vmmov 0   ;;  %vm1575_vm1 = vcmask 1047557  }
  0x14   : > { %v302_v1 = vld [vmem:[%s3243_s1 + $0x78] sm:$0xff]  ;;  %2052 = vmatprep.subr.mxu0 %v350_v0  ;;  %v301_v3 = vld [vmem:[%s3243_s1 + $0x70] sm:$0xff]  ;;  %v300_v5 = vld [vmem:[%s3243_s1 + $0x68] sm:$0xff]  ;;  %s2407_s18 = smul.u32 40, %s3256_s28  ;;  %vm1484_vm2 = vcmask 1044480   ;;  %vm1671_vm3 = vcmask 1041409  }
  0x15   : > { %2132 = vmatprep.subr.mxu1 %v302_v1  ;;  %2053 = vmatpush3.msra.mxu0 %v350_v0  ;;  %v347_v6 = vld [vmem:[%s3243_s1 + $0xe0] sm:$0xff]  ;;  %v346_v8 = vld [vmem:[%s3243_s1 + $0xd8] sm:$0xff]  ;;  %v345_v10 = vld [vmem:[%s3243_s1 + $0xd0] sm:$0xff]  ;;  %vm1673_vm4 = vcmask 1042434   ;;  %vm1675_vm5 = vcmask 1043459   ;;  %vm1677_vm6 = vcmask 1044484  }
  0x16   : > { %2133 = vmatpush3.msra.mxu1 %v302_v1  ;;  %2054 = vmatprep.subr.mxu0 %v349_v2  ;;  %v299_v7 = vld [vmem:[%s3243_s1 + $0x60] sm:$0xff]  ;;  %v298_v9 = vld [vmem:[%s3243_s1 + $0x58] sm:$0xff]  ;;  %v297_v11 = vld [vmem:[%s3243_s1 + $0x50] sm:$0xff]  ;;  %s2691_s14 = scalar_lea.vmem %s3242_s0, %s2407_s18  ;;  %vm1679_vm7 = vcmask 1045509   ;;  %vm1681_vm8 = vcmask 1046534   ;;  %vm1683_vm9 = vcmask 1047559  }
  0x17   : > { %2134 = vmatprep.subr.mxu1 %v301_v3  ;;  %2055 = vmatpush3.msra.mxu0 %v349_v2  ;;  %v344_v12 = vld [vmem:[%s3243_s1 + $0xc8] sm:$0xff]  ;;  %v343_v14 = vld [vmem:[%s3243_s1 + $0xc0] sm:$0xff]  ;;  %v342_v16 = vld [vmem:[%s3243_s1 + $0xb8] sm:$0xff] }
  0x18   : > { %2135 = vmatpush3.msra.mxu1 %v301_v3  ;;  %2056 = vmatprep.subr.mxu0 %v348_v4  ;;  %v296_v13 = vld [vmem:[%s3243_s1 + $0x48] sm:$0xff]  ;;  %v295_v15 = vld [vmem:[%s3243_s1 + $0x40] sm:$0xff]  ;;  %v294_v17 = vld [vmem:[%s3243_s1 + $0x38] sm:$0xff] }
  0x19   : > { %2136 = vmatprep.subr.mxu1 %v300_v5  ;;  %2057 = vmatpush3.msra.mxu0 %v348_v4  ;;  %v341_v18 = vld [vmem:[%s3243_s1 + $0xb0] sm:$0xff]  ;;  %v340_v20 = vld [vmem:[%s3243_s1 + $0xa8] sm:$0xff]  ;;  %v339_v22 = vld [vmem:[%s3243_s1 + $0xa0] sm:$0xff] }
  0x1a   : > { %2137 = vmatpush3.msra.mxu1 %v300_v5  ;;  %2058 = vmatprep.subr.mxu0 %v347_v6  ;;  %v293_v19 = vld [vmem:[%s3243_s1 + $0x30] sm:$0xff]  ;;  %v292_v21 = vld [vmem:[%s3243_s1 + $0x28] sm:$0xff]  ;;  %v291_v23 = vld [vmem:[%s3243_s1 + $0x20] sm:$0xff] }
  0x1b   : > { %2138 = vmatprep.subr.mxu1 %v299_v7  ;;  %2059 = vmatpush3.msra.mxu0 %v347_v6  ;;  %v338_v24 = vld [vmem:[%s3243_s1 + $0x98] sm:$0xff]  ;;  %v337_v26 = vld [vmem:[%s3243_s1 + $0x90] sm:$0xff]  ;;  %v336_v28 = vld [vmem:[%s3243_s1 + $0x88] sm:$0xff] }
  0x1c   : > { %2139 = vmatpush3.msra.mxu1 %v299_v7  ;;  %2060 = vmatprep.subr.mxu0 %v346_v8  ;;  %v290_v25 = vld [vmem:[%s3243_s1 + $0x18] sm:$0xff]  ;;  %v289_v27 = vld [vmem:[%s3243_s1 + $0x10] sm:$0xff]  ;;  %v288_v29 = vld [vmem:[%s3243_s1 + $0x8] sm:$0xff] }
  0x1d   : > { %2140 = vmatprep.subr.mxu1 %v298_v9  ;;  %2061 = vmatpush3.msra.mxu0 %v346_v8  ;;  %v335_v30 = vld [vmem:[%s3243_s1 + $0x80] sm:$0xff]  ;;  %v304_v34 = vld [vmem:[%s2691_s14 + $0x9] sm:$0xff]  ;;  %v848_v36 = vld [vmem:[%s3243_s1 + $0x178] sm:$0xff] }
  0x1e   : > { %2141 = vmatpush3.msra.mxu1 %v298_v9  ;;  %2062 = vmatprep.subr.mxu0 %v345_v10  ;;  %v287_v31 = vld [vmem:[%s3243_s1] sm:$0xff]  ;;  %v256_v35 = vld [vmem:[%s2691_s14 + $0x8] sm:$0xff]  ;;  %v1153_v37 = vld [vmem:[%s3243_s1 + $0x1f8] sm:$0xff] }
  0x1f   : > { %2142 = vmatprep.subr.mxu1 %v297_v11  ;;  %2063 = vmatpush3.msra.mxu0 %v345_v10  ;;  %v303_v32 = vld [vmem:[%s2691_s14 + $0x1] sm:$0xff]  ;;  %v305_v38 = vld [vmem:[%s2691_s14 + $0x11] sm:$0xff]  ;;  %v306_v40 = vld [vmem:[%s2691_s14 + $0x19] sm:$0xff] }
  0x20   : > { %2143 = vmatpush3.msra.mxu1 %v297_v11  ;;  %2064 = vmatprep.subr.mxu0 %v344_v12  ;;  %v255_v33 = vld [vmem:[%s2691_s14] sm:$0xff]  ;;  %v257_v39 = vld [vmem:[%s2691_s14 + $0x10] sm:$0xff]  ;;  %v258_v41 = vld [vmem:[%s2691_s14 + $0x18] sm:$0xff] }
  0x21   : > { %2144 = vmatprep.subr.mxu1 %v296_v13  ;;  %2065 = vmatpush3.msra.mxu0 %v344_v12  ;;  %v847_v42 = vld [vmem:[%s3243_s1 + $0x170] sm:$0xff]  ;;  %v259_v45 = vld [vmem:[%s2691_s14 + $0x28] sm:$0xff]  ;;  %v309_v50 = vld [vmem:[%s2691_s14 + $0x39] sm:$0xff] }
  0x22   : > { %2145 = vmatpush3.msra.mxu1 %v296_v13  ;;  %2066 = vmatprep.subr.mxu0 %v343_v14  ;;  %v1152_v43 = vld [vmem:[%s3243_s1 + $0x1f0] sm:$0xff]  ;;  %v846_v48 = vld [vmem:[%s3243_s1 + $0x168] sm:$0xff]  ;;  %v261_v51 = vld [vmem:[%s2691_s14 + $0x38] sm:$0xff] }
  0x23   : > { %2146 = vmatprep.subr.mxu1 %v295_v15  ;;  %2067 = vmatpush3.msra.mxu0 %v343_v14  ;;  %v307_v44 = vld [vmem:[%s2691_s14 + $0x29] sm:$0xff]  ;;  %v308_v46 = vld [vmem:[%s2691_s14 + $0x31] sm:$0xff]  ;;  %v310_v52 = vld [vmem:[%s2691_s14 + $0x41] sm:$0xff] }
  0x24   : > { %2147 = vmatpush3.msra.mxu1 %v295_v15  ;;  %2068 = vmatprep.subr.mxu0 %v342_v16  ;;  %v260_v47 = vld [vmem:[%s2691_s14 + $0x30] sm:$0xff]  ;;  %v1151_v49 = vld [vmem:[%s3243_s1 + $0x1e8] sm:$0xff]  ;;  %v262_v53 = vld [vmem:[%s2691_s14 + $0x40] sm:$0xff] }
  0x25   : > { %2148 = vmatprep.subr.mxu1 %v294_v17  ;;  %2069 = vmatpush3.msra.mxu0 %v342_v16  ;;  %v845_v54 = vld [vmem:[%s3243_s1 + $0x160] sm:$0xff]  ;;  %v311_v56 = vld [vmem:[%s2691_s14 + $0x51] sm:$0xff]  ;;  %v314_v0 = vld [vmem:[%s2691_s14 + $0x69] sm:$0xff] }
  0x26   : > { %2149 = vmatpush3.msra.mxu1 %v294_v17  ;;  %2070 = vmatprep.subr.mxu0 %v341_v18  ;;  %v1150_v55 = vld [vmem:[%s3243_s1 + $0x1e0] sm:$0xff]  ;;  %v263_v57 = vld [vmem:[%s2691_s14 + $0x50] sm:$0xff]  ;;  %v264_v59 = vld [vmem:[%s2691_s14 + $0x58] sm:$0xff] }
  0x27   : > { %2150 = vmatprep.subr.mxu1 %v293_v19  ;;  %2071 = vmatpush3.msra.mxu0 %v341_v18  ;;  %v312_v58 = vld [vmem:[%s2691_s14 + $0x59] sm:$0xff]  ;;  %v313_v62 = vld [vmem:[%s2691_s14 + $0x61] sm:$0xff]  ;;  %v843_v2 = vld [vmem:[%s3243_s1 + $0x150] sm:$0xff] }
  0x28   : > { %2151 = vmatpush3.msra.mxu1 %v293_v19  ;;  %2072 = vmatprep.subr.mxu0 %v340_v20  ;;  %v844_v60 = vld [vmem:[%s3243_s1 + $0x158] sm:$0xff]  ;;  %v265_v63 = vld [vmem:[%s2691_s14 + $0x60] sm:$0xff]  ;;  %v266_v1 = vld [vmem:[%s2691_s14 + $0x68] sm:$0xff] }
  0x29   : > { %2152 = vmatprep.subr.mxu1 %v292_v21  ;;  %2073 = vmatpush3.msra.mxu0 %v340_v20  ;;  %v1149_v61 = vld [vmem:[%s3243_s1 + $0x1d8] sm:$0xff]  ;;  %v1148_v3 = vld [vmem:[%s3243_s1 + $0x1d0] sm:$0xff]  ;;  %v316_v6 = vld [vmem:[%s2691_s14 + $0x81] sm:$0xff] }
  0x2a   : > { %2153 = vmatpush3.msra.mxu1 %v292_v21  ;;  %2074 = vmatprep.subr.mxu0 %v339_v22  ;;  %v315_v4 = vld [vmem:[%s2691_s14 + $0x79] sm:$0xff]  ;;  %v842_v8 = vld [vmem:[%s3243_s1 + $0x148] sm:$0xff]  ;;  %v318_v12 = vld [vmem:[%s2691_s14 + $0x91] sm:$0xff] }
  0x2b   : > { %2154 = vmatprep.subr.mxu1 %v291_v23  ;;  %2075 = vmatpush3.msra.mxu0 %v339_v22  ;;  %v267_v5 = vld [vmem:[%s2691_s14 + $0x78] sm:$0xff]  ;;  %v268_v7 = vld [vmem:[%s2691_s14 + $0x80] sm:$0xff]  ;;  %v1147_v9 = vld [vmem:[%s3243_s1 + $0x1c8] sm:$0xff] }
  0x2c   : > { %2155 = vmatpush3.msra.mxu1 %v291_v23  ;;  %2076 = vmatprep.subr.mxu0 %v338_v24  ;;  %v317_v10 = vld [vmem:[%s2691_s14 + $0x89] sm:$0xff]  ;;  %v841_v14 = vld [vmem:[%s3243_s1 + $0x140] sm:$0xff]  ;;  %v840_v20 = vld [vmem:[%s3243_s1 + $0x138] sm:$0xff] }
  0x2d   : > { %2156 = vmatprep.subr.mxu1 %v290_v25  ;;  %2077 = vmatpush3.msra.mxu0 %v338_v24  ;;  %v269_v11 = vld [vmem:[%s2691_s14 + $0x88] sm:$0xff]  ;;  %v270_v13 = vld [vmem:[%s2691_s14 + $0x90] sm:$0xff]  ;;  %v1146_v15 = vld [vmem:[%s3243_s1 + $0x1c0] sm:$0xff] }
  0x2e   : > { %2157 = vmatpush3.msra.mxu1 %v290_v25  ;;  %2078 = vmatprep.subr.mxu0 %v337_v26  ;;  %v319_v16 = vld [vmem:[%s2691_s14 + $0xa1] sm:$0xff]  ;;  %v320_v18 = vld [vmem:[%s2691_s14 + $0xa9] sm:$0xff]  ;;  %v1145_v21 = vld [vmem:[%s3243_s1 + $0x1b8] sm:$0xff] }
  0x2f   : > { %2158 = vmatprep.subr.mxu1 %v289_v27  ;;  %2079 = vmatpush3.msra.mxu0 %v337_v26  ;;  %v271_v17 = vld [vmem:[%s2691_s14 + $0xa0] sm:$0xff]  ;;  %v272_v19 = vld [vmem:[%s2691_s14 + $0xa8] sm:$0xff]  ;;  %v321_v22 = vld [vmem:[%s2691_s14 + $0xb1] sm:$0xff] }
  0x30   : > { %2159 = vmatpush3.msra.mxu1 %v289_v27  ;;  %2080 = vmatprep.subr.mxu0 %v336_v28  ;;  %v273_v23 = vld [vmem:[%s2691_s14 + $0xb0] sm:$0xff]  ;;  %v322_v24 = vld [vmem:[%s2691_s14 + $0xb9] sm:$0xff] }
  0x31   : > { %2160 = vmatprep.subr.mxu1 %v288_v29  ;;  %2081 = vmatpush3.msra.mxu0 %v336_v28  ;;  %v274_v25 = vld [vmem:[%s2691_s14 + $0xb8] sm:$0xff]  ;;  %v839_v26 = vld [vmem:[%s3243_s1 + $0x130] sm:$0xff] }
  0x32   : > { %2161 = vmatpush3.msra.mxu1 %v288_v29  ;;  %2082 = vmatprep.subr.mxu0 %v335_v30  ;;  %v1144_v27 = vld [vmem:[%s3243_s1 + $0x1b0] sm:$0xff]  ;;  %v275_v29 = vld [vmem:[%s2691_s14 + $0xc8] sm:$0xff] }
  0x33   : > { %2162 = vmatprep.subr.mxu1 %v287_v31  ;;  %2083 = vmatpush3.msra.mxu0 %v335_v30  ;;  %v323_v28 = vld [vmem:[%s2691_s14 + $0xc9] sm:$0xff]  ;;  %v324_v30 = vld [vmem:[%s2691_s14 + $0xd1] sm:$0xff] }
  0x34   : > { %2084 = vmatprep.mubr.f32.mxu0 %v303_v32  ;;  %2163 = vmatpush3.msra.mxu1 %v287_v31  ;;  %v276_v31 = vld [vmem:[%s2691_s14 + $0xd0] sm:$0xff]  ;;  %v838_v32 = vld [vmem:[%s3243_s1 + $0x128] sm:$0xff] }
  0x35   : > { %2164 = vmatprep.mubr.f32.mxu1 %v255_v33  ;;  %2085 = vmatmul.mubr.f32.vlgmr.msra.gmra.mxu0 %v304_v34  ;;  %v1143_v33 = vld [vmem:[%s3243_s1 + $0x1a8] sm:$0xff]  ;;  %v325_v34 = vld [vmem:[%s2691_s14 + $0xd9] sm:$0xff] }
  0x36   : > { %2165 = vmatmul.mubr.f32.vlgmr.msra.gmra.mxu1 %v256_v35  ;;  %2212 = vmatprep.subr.mxu0 %v848_v36  ;;  %v277_v35 = vld [vmem:[%s2691_s14 + $0xd8] sm:$0xff] }
  0x37   : > { %2292 = vmatprep.subr.mxu1 %v1153_v37  ;;  %2213 = vmatpush3.msra.mxu0 %v848_v36  ;;  %v326_v36 = vld [vmem:[%s2691_s14 + $0xe1] sm:$0xff] }
  0x38   : > { %2087 = vmatprep.mubr.f32.mxu0 %v305_v38  ;;  %2167 = vmatprep.mubr.f32.mxu1 %v257_v39  ;;  %v837_v38 = vld [vmem:[%s3243_s1 + $0x120] sm:$0xff] }
  0x39   : > { %2293 = vmatpush3.msra.mxu1 %v1153_v37  ;;  %2088 = vmatmul.mubr.f32.gmra.mxu0 %v306_v40  ;;  %v278_v37 = vld [vmem:[%s2691_s14 + $0xe0] sm:$0xff]  ;;  %v327_v40 = vld [vmem:[%s2691_s14 + $0xf1] sm:$0xff] }
  0x3a   : > { %2168 = vmatmul.mubr.f32.gmra.mxu1 %v258_v41  ;;  %2214 = vmatprep.subr.mxu0 %v847_v42  ;;  %v1142_v39 = vld [vmem:[%s3243_s1 + $0x1a0] sm:$0xff]  ;;  %v279_v41 = vld [vmem:[%s2691_s14 + $0xf0] sm:$0xff] }
  0x3b   : > { %2294 = vmatprep.subr.mxu1 %v1152_v43  ;;  %2215 = vmatpush3.msra.mxu0 %v847_v42  ;;  %v328_v42 = vld [vmem:[%s2691_s14 + $0xf9] sm:$0xff] }
  0x3c   : > { %2090 = vmatprep.mubr.f32.mxu0 %v307_v44  ;;  %2170 = vmatprep.mubr.f32.mxu1 %v259_v45  ;;  %v836_v44 = vld [vmem:[%s3243_s1 + $0x118] sm:$0xff] }
  0x3d   : > { %2295 = vmatpush3.msra.mxu1 %v1152_v43  ;;  %2091 = vmatmul.mubr.f32.gmra.mxu0 %v308_v46  ;;  %v280_v43 = vld [vmem:[%s2691_s14 + $0xf8] sm:$0xff]  ;;  %v329_v46 = vld [vmem:[%s2691_s14 + $0x101] sm:$0xff] }
  0x3e   : > { %2171 = vmatmul.mubr.f32.gmra.mxu1 %v260_v47  ;;  %2216 = vmatprep.subr.mxu0 %v846_v48  ;;  %v1141_v45 = vld [vmem:[%s3243_s1 + $0x198] sm:$0xff]  ;;  %v281_v47 = vld [vmem:[%s2691_s14 + $0x100] sm:$0xff] }
  0x3f   : > { %2296 = vmatprep.subr.mxu1 %v1151_v49  ;;  %2217 = vmatpush3.msra.mxu0 %v846_v48  ;;  %v330_v48 = vld [vmem:[%s2691_s14 + $0x109] sm:$0xff] }
  0x40   : > { %2093 = vmatprep.mubr.f32.mxu0 %v309_v50  ;;  %2173 = vmatprep.mubr.f32.mxu1 %v261_v51  ;;  %v835_v50 = vld [vmem:[%s3243_s1 + $0x110] sm:$0xff] }
  0x41   : > { %2297 = vmatpush3.msra.mxu1 %v1151_v49  ;;  %2094 = vmatmul.mubr.f32.gmra.mxu0 %v310_v52  ;;  %v282_v49 = vld [vmem:[%s2691_s14 + $0x108] sm:$0xff]  ;;  %v1140_v51 = vld [vmem:[%s3243_s1 + $0x190] sm:$0xff]  ;;  %v331_v52 = vld [vmem:[%s2691_s14 + $0x119] sm:$0xff] }
  0x42   : > { %2174 = vmatmul.mubr.f32.gmra.mxu1 %v262_v53  ;;  %2218 = vmatprep.subr.mxu0 %v845_v54  ;;  %v283_v53 = vld [vmem:[%s2691_s14 + $0x118] sm:$0xff] }
  0x43   : > { %2298 = vmatprep.subr.mxu1 %v1150_v55  ;;  %2219 = vmatpush3.msra.mxu0 %v845_v54  ;;  %v332_v54 = vld [vmem:[%s2691_s14 + $0x121] sm:$0xff] }
  0x44   : > { %2096 = vmatprep.mubr.f32.mxu0 %v311_v56  ;;  %2176 = vmatprep.mubr.f32.mxu1 %v263_v57  ;;  %v834_v56 = vld [vmem:[%s3243_s1 + $0x108] sm:$0xff] }
  0x45   : > { %2299 = vmatpush3.msra.mxu1 %v1150_v55  ;;  %2097 = vmatmul.mubr.f32.gmra.mxu0 %v312_v58  ;;  %v284_v55 = vld [vmem:[%s2691_s14 + $0x120] sm:$0xff]  ;;  %v1139_v57 = vld [vmem:[%s3243_s1 + $0x188] sm:$0xff] }
  0x46   : > { %2177 = vmatmul.mubr.f32.gmra.mxu1 %v264_v59  ;;  %2220 = vmatprep.subr.mxu0 %v844_v60  ;;  %v333_v58 = vld [vmem:[%s2691_s14 + $0x129] sm:$0xff] }
  0x47   : > { %2300 = vmatprep.subr.mxu1 %v1149_v61  ;;  %2221 = vmatpush3.msra.mxu0 %v844_v60  ;;  %v285_v59 = vld [vmem:[%s2691_s14 + $0x128] sm:$0xff]  ;;  %v334_v60 = vld [vmem:[%s2691_s14 + $0x131] sm:$0xff] }
  0x48   : > { %2099 = vmatprep.mubr.f32.mxu0 %v313_v62  ;;  %2179 = vmatprep.mubr.f32.mxu1 %v265_v63  ;;  %v833_v62 = vld [vmem:[%s3243_s1 + $0x100] sm:$0xff] }
  0x49   : > { %2301 = vmatpush3.msra.mxu1 %v1149_v61  ;;  %2100 = vmatmul.mubr.f32.gmra.mxu0 %v314_v0  ;;  %v286_v61 = vld [vmem:[%s2691_s14 + $0x130] sm:$0xff]  ;;  %v1138_v63 = vld [vmem:[%s3243_s1 + $0x180] sm:$0xff] }
  0x4a   : > { %2180 = vmatmul.mubr.f32.gmra.mxu1 %v266_v1  ;;  %2222 = vmatprep.subr.mxu0 %v843_v2  ;;  %v801_v0 = vld [vmem:[%s2691_s14 + $0x2] sm:$0xff] }
  0x4b   : > { %2302 = vmatprep.subr.mxu1 %v1148_v3  ;;  %2223 = vmatpush3.msra.mxu0 %v843_v2  ;;  %v1106_v1 = vld [vmem:[%s2691_s14 + $0x3] sm:$0xff] }
  0x4c   : > { %2102 = vmatprep.mubr.f32.mxu0 %v315_v4  ;;  %2182 = vmatprep.mubr.f32.mxu1 %v267_v5  ;;  %v802_v2 = vld [vmem:[%s2691_s14 + $0xa] sm:$0xff]  ;;  %v803_v4 = vld [vmem:[%s2691_s14 + $0x12] sm:$0xff] }
  0x4d   : > { %2303 = vmatpush3.msra.mxu1 %v1148_v3  ;;  %2103 = vmatmul.mubr.f32.gmra.mxu0 %v316_v6  ;;  %v1107_v3 = vld [vmem:[%s2691_s14 + $0xb] sm:$0xff]  ;;  %v1108_v5 = vld [vmem:[%s2691_s14 + $0x13] sm:$0xff] }
  0x4e   : > { %2183 = vmatmul.mubr.f32.gmra.mxu1 %v268_v7  ;;  %2224 = vmatprep.subr.mxu0 %v842_v8  ;;  %v804_v6 = vld [vmem:[%s2691_s14 + $0x1a] sm:$0xff] }
  0x4f   : > { %2304 = vmatprep.subr.mxu1 %v1147_v9  ;;  %2225 = vmatpush3.msra.mxu0 %v842_v8  ;;  %v1109_v7 = vld [vmem:[%s2691_s14 + $0x1b] sm:$0xff]  ;;  %v805_v8 = vld [vmem:[%s2691_s14 + $0x2a] sm:$0xff] }
  0x50   : > { %2105 = vmatprep.mubr.f32.mxu0 %v317_v10  ;;  %2185 = vmatprep.mubr.f32.mxu1 %v269_v11  ;;  %v806_v10 = vld [vmem:[%s2691_s14 + $0x32] sm:$0xff] }
  0x51   : > { %2305 = vmatpush3.msra.mxu1 %v1147_v9  ;;  %2106 = vmatmul.mubr.f32.gmra.mxu0 %v318_v12  ;;  %v1110_v9 = vld [vmem:[%s2691_s14 + $0x2b] sm:$0xff]  ;;  %v1111_v11 = vld [vmem:[%s2691_s14 + $0x33] sm:$0xff] }
  0x52   : > { %2186 = vmatmul.mubr.f32.gmra.mxu1 %v270_v13  ;;  %2226 = vmatprep.subr.mxu0 %v841_v14  ;;  %v807_v12 = vld [vmem:[%s2691_s14 + $0x3a] sm:$0xff] }
  0x53   : > { %2306 = vmatprep.subr.mxu1 %v1146_v15  ;;  %2227 = vmatpush3.msra.mxu0 %v841_v14  ;;  %v1112_v13 = vld [vmem:[%s2691_s14 + $0x3b] sm:$0xff] }
  0x54   : > { %2108 = vmatprep.mubr.f32.mxu0 %v319_v16  ;;  %2188 = vmatprep.mubr.f32.mxu1 %v271_v17  ;;  %v808_v14 = vld [vmem:[%s2691_s14 + $0x42] sm:$0xff]  ;;  %v809_v16 = vld [vmem:[%s2691_s14 + $0x52] sm:$0xff] }
  0x55   : > { %2307 = vmatpush3.msra.mxu1 %v1146_v15  ;;  %2109 = vmatmul.mubr.f32.gmra.mxu0 %v320_v18  ;;  %v1113_v15 = vld [vmem:[%s2691_s14 + $0x43] sm:$0xff]  ;;  %v1114_v17 = vld [vmem:[%s2691_s14 + $0x53] sm:$0xff] }
  0x56   : > { %2189 = vmatmul.mubr.f32.gmra.mxu1 %v272_v19  ;;  %2228 = vmatprep.subr.mxu0 %v840_v20  ;;  %v810_v18 = vld [vmem:[%s2691_s14 + $0x5a] sm:$0xff] }
  0x57   : > { %2308 = vmatprep.subr.mxu1 %v1145_v21  ;;  %2229 = vmatpush3.msra.mxu0 %v840_v20  ;;  %v1115_v19 = vld [vmem:[%s2691_s14 + $0x5b] sm:$0xff] }
  0x58   : > { %2111 = vmatprep.mubr.f32.mxu0 %v321_v22  ;;  %2191 = vmatprep.mubr.f32.mxu1 %v273_v23  ;;  %v811_v20 = vld [vmem:[%s2691_s14 + $0x62] sm:$0xff]  ;;  %v812_v22 = vld [vmem:[%s2691_s14 + $0x6a] sm:$0xff] }
  0x59   : > { %2309 = vmatpush3.msra.mxu1 %v1145_v21  ;;  %2112 = vmatmul.mubr.f32.gmra.mxu0 %v322_v24  ;;  %v1116_v21 = vld [vmem:[%s2691_s14 + $0x63] sm:$0xff]  ;;  %v1117_v23 = vld [vmem:[%s2691_s14 + $0x6b] sm:$0xff]  ;;  %v813_v24 = vld [vmem:[%s2691_s14 + $0x7a] sm:$0xff] }
  0x5a   : > { %2192 = vmatmul.mubr.f32.gmra.mxu1 %v274_v25  ;;  %2230 = vmatprep.subr.mxu0 %v839_v26  ;;  %v1118_v25 = vld [vmem:[%s2691_s14 + $0x7b] sm:$0xff] }
  0x5b   : > { %2310 = vmatprep.subr.mxu1 %v1144_v27  ;;  %2231 = vmatpush3.msra.mxu0 %v839_v26  ;;  %v814_v26 = vld [vmem:[%s2691_s14 + $0x82] sm:$0xff] }
  0x5c   : > { %2114 = vmatprep.mubr.f32.mxu0 %v323_v28  ;;  %2194 = vmatprep.mubr.f32.mxu1 %v275_v29  ;;  %v815_v28 = vld [vmem:[%s2691_s14 + $0x8a] sm:$0xff] }
  0x5d   : > { %2311 = vmatpush3.msra.mxu1 %v1144_v27  ;;  %2115 = vmatmul.mubr.f32.gmra.mxu0 %v324_v30  ;;  %v1119_v27 = vld [vmem:[%s2691_s14 + $0x83] sm:$0xff]  ;;  %v1120_v29 = vld [vmem:[%s2691_s14 + $0x8b] sm:$0xff] }
  0x5e   : > { %2195 = vmatmul.mubr.f32.gmra.mxu1 %v276_v31  ;;  %2232 = vmatprep.subr.mxu0 %v838_v32  ;;  %v816_v30 = vld [vmem:[%s2691_s14 + $0x92] sm:$0xff] }
  0x5f   : > { %2312 = vmatprep.subr.mxu1 %v1143_v33  ;;  %2233 = vmatpush3.msra.mxu0 %v838_v32  ;;  %v1121_v31 = vld [vmem:[%s2691_s14 + $0x93] sm:$0xff]  ;;  %v817_v32 = vld [vmem:[%s2691_s14 + $0xa2] sm:$0xff] }
  0x60   : > { %2117 = vmatprep.mubr.f32.mxu0 %v325_v34  ;;  %2197 = vmatprep.mubr.f32.mxu1 %v277_v35  ;;  %v818_v34 = vld [vmem:[%s2691_s14 + $0xaa] sm:$0xff] }
  0x61   : > { %2313 = vmatpush3.msra.mxu1 %v1143_v33  ;;  %2118 = vmatmul.mubr.f32.gmra.mxu0 %v326_v36  ;;  %v1122_v33 = vld [vmem:[%s2691_s14 + $0xa3] sm:$0xff]  ;;  %v1123_v35 = vld [vmem:[%s2691_s14 + $0xab] sm:$0xff] }
  0x62   : > { %2198 = vmatmul.mubr.f32.gmra.mxu1 %v278_v37  ;;  %2234 = vmatprep.subr.mxu0 %v837_v38  ;;  %v819_v36 = vld [vmem:[%s2691_s14 + $0xb2] sm:$0xff] }
  0x63   : > { %2314 = vmatprep.subr.mxu1 %v1142_v39  ;;  %2235 = vmatpush3.msra.mxu0 %v837_v38  ;;  %v1124_v37 = vld [vmem:[%s2691_s14 + $0xb3] sm:$0xff] }
  0x64   : > { %2120 = vmatprep.mubr.f32.mxu0 %v327_v40  ;;  %2200 = vmatprep.mubr.f32.mxu1 %v279_v41  ;;  %v820_v38 = vld [vmem:[%s2691_s14 + $0xba] sm:$0xff]  ;;  %v821_v40 = vld [vmem:[%s2691_s14 + $0xca] sm:$0xff] }
  0x65   : > { %2315 = vmatpush3.msra.mxu1 %v1142_v39  ;;  %2121 = vmatmul.mubr.f32.gmra.mxu0 %v328_v42  ;;  %v1125_v39 = vld [vmem:[%s2691_s14 + $0xbb] sm:$0xff]  ;;  %v1126_v41 = vld [vmem:[%s2691_s14 + $0xcb] sm:$0xff] }
  0x66   : > { %2201 = vmatmul.mubr.f32.gmra.mxu1 %v280_v43  ;;  %2236 = vmatprep.subr.mxu0 %v836_v44  ;;  %v822_v42 = vld [vmem:[%s2691_s14 + $0xd2] sm:$0xff] }
  0x67   : > { %2316 = vmatprep.subr.mxu1 %v1141_v45  ;;  %2237 = vmatpush3.msra.mxu0 %v836_v44  ;;  %v1127_v43 = vld [vmem:[%s2691_s14 + $0xd3] sm:$0xff] }
  0x68   : > { %2123 = vmatprep.mubr.f32.mxu0 %v329_v46  ;;  %2203 = vmatprep.mubr.f32.mxu1 %v281_v47  ;;  %v823_v44 = vld [vmem:[%s2691_s14 + $0xda] sm:$0xff]  ;;  %v824_v46 = vld [vmem:[%s2691_s14 + $0xe2] sm:$0xff] }
  0x69   : > { %2317 = vmatpush3.msra.mxu1 %v1141_v45  ;;  %2124 = vmatmul.mubr.f32.gmra.mxu0 %v330_v48  ;;  %v1128_v45 = vld [vmem:[%s2691_s14 + $0xdb] sm:$0xff]  ;;  %v1129_v47 = vld [vmem:[%s2691_s14 + $0xe3] sm:$0xff]  ;;  %v825_v48 = vld [vmem:[%s2691_s14 + $0xf2] sm:$0xff] }
  0x6a   : > { %2204 = vmatmul.mubr.f32.gmra.mxu1 %v282_v49  ;;  %2238 = vmatprep.subr.mxu0 %v835_v50  ;;  %v1130_v49 = vld [vmem:[%s2691_s14 + $0xf3] sm:$0xff] }
  0x6b   : > { %2318 = vmatprep.subr.mxu1 %v1140_v51  ;;  %2239 = vmatpush3.msra.mxu0 %v835_v50  ;;  %v826_v50 = vld [vmem:[%s2691_s14 + $0xfa] sm:$0xff] }
  0x6c   : > { %2126 = vmatprep.mubr.f32.mxu0 %v331_v52  ;;  %2206 = vmatprep.mubr.f32.mxu1 %v283_v53  ;;  %v827_v52 = vld [vmem:[%s2691_s14 + $0x102] sm:$0xff] }
  0x6d   : > { %2319 = vmatpush3.msra.mxu1 %v1140_v51  ;;  %2127 = vmatmul.mubr.f32.gmra.mxu0 %v332_v54  ;;  %v1131_v51 = vld [vmem:[%s2691_s14 + $0xfb] sm:$0xff]  ;;  %v1132_v53 = vld [vmem:[%s2691_s14 + $0x103] sm:$0xff] }
  0x6e   : > { %2207 = vmatmul.mubr.f32.gmra.mxu1 %v284_v55  ;;  %2240 = vmatprep.subr.mxu0 %v834_v56  ;;  %v828_v54 = vld [vmem:[%s2691_s14 + $0x10a] sm:$0xff] }
  0x6f   : > { %2320 = vmatprep.subr.mxu1 %v1139_v57  ;;  %2241 = vmatpush3.msra.mxu0 %v834_v56  ;;  %v1133_v55 = vld [vmem:[%s2691_s14 + $0x10b] sm:$0xff]  ;;  %v829_v56 = vld [vmem:[%s2691_s14 + $0x11a] sm:$0xff] }
  0x70   : > { %2129 = vmatprep.mubr.f32.mxu0 %v333_v58  ;;  %2209 = vmatprep.mubr.f32.mxu1 %v285_v59  ;;  %v830_v58 = vld [vmem:[%s2691_s14 + $0x122] sm:$0xff] }
  0x71   : > { %2321 = vmatpush3.msra.mxu1 %v1139_v57  ;;  %2130 = vmatmul.mubr.f32.gmra.mxu0 %v334_v60  ;;  %v1134_v57 = vld [vmem:[%s2691_s14 + $0x11b] sm:$0xff]  ;;  %v1135_v59 = vld [vmem:[%s2691_s14 + $0x123] sm:$0xff] }
  0x72   : > { %2210 = vmatmul.mubr.f32.gmra.mxu1 %v286_v61  ;;  %2242 = vmatprep.subr.mxu0 %v833_v62  ;;  %v831_v60 = vld [vmem:[%s2691_s14 + $0x12a] sm:$0xff] }
  0x73   : > { %2322 = vmatprep.subr.mxu1 %v1138_v63  ;;  %2243 = vmatpush3.msra.mxu0 %v833_v62  ;;  %v1136_v61 = vld [vmem:[%s2691_s14 + $0x12b] sm:$0xff] }
  0x74   : > { %2244 = vmatprep.mubr.f32.mxu0 %v801_v0  ;;  %2323 = vmatpush3.msra.mxu1 %v1138_v63  ;;  %v832_v62 = vld [vmem:[%s2691_s14 + $0x132] sm:$0xff] }
  0x75   : > { %2324 = vmatprep.mubr.f32.mxu1 %v1106_v1  ;;  %2245 = vmatmul.mubr.f32.vlgmr.msra.gmra.mxu0 %v802_v2  ;;  %v1137_v63 = vld [vmem:[%s2691_s14 + $0x133] sm:$0xff]  ;;  %v2511_v1 = vmov 0.0   ;;  %s245_s14 = sand.u32 1, %s2501_s22  }
  0x76   : > { %2325 = vmatmul.mubr.f32.vlgmr.msra.gmra.mxu1 %v1107_v3  ;;  %2247 = vmatprep.mubr.f32.mxu0 %v803_v4  ;;  %v1655_v0 = vld [vmem:[%s3246_s4 + $0x78] sm:$0xff]  ;;  %v1654_v2 = vld [vmem:[%s3246_s4 + $0x70] sm:$0xff]  ;;  %v1653_v3 = vld [vmem:[%s3246_s4 + $0x68] sm:$0xff]  ;;  %s1834_s18 = sshll.u32 %s245_s14, 3  ;;  %s1758_s13 = scalar_lea.sflag [#allocation3], %s245_s14 }
  0x77   : > { %2327 = vmatprep.mubr.f32.mxu1 %v1108_v5  ;;  %2372 = vmatprep.subr.mxu0 %v2511_v1  ;;  %s247_s9 = scalar_lea.vmem [#allocation2], %s1834_s18 }
  0x78   : > { %2373 = vmatpush3.msra.mxu0 %v1655_v0  ;;  %s1771_s10 = sshll.u32 %s247_s9, 4  ;;  %s1772_s10 = int_to_ptr.vmem [resolvable:$true] %s1771_s10 }
  0x79   : > { %2248 = vmatmul.mubr.f32.gmra.mxu0 %v804_v6  ;;  %2374 = vmatprep.subr.mxu0 %v2511_v1  ;;  %s2449_s15 = scalar_lea.vmem %s1772_s10, 128  ;;  %p2456_p0 = scmp.lt.s32.totalorder %s1772_s10, %s2454_s25 }
  0x7a   : > { %2328 = vmatmul.mubr.f32.gmra.mxu1 %v1109_v7  ;;  %2250 = vmatprep.mubr.f32.mxu0 %v805_v8  ;;  %p2450_p11 = scmp.ne.s32.totalorder %s1772_s10, %s2449_s15  ;;  %p2457_p1 = scmp.lt.s32.totalorder %s2455_s17, %s2449_s15 }
  0x7b   : > { %2330 = vmatprep.mubr.f32.mxu1 %v1110_v9  ;;  %2375 = vmatpush3.msra.mxu0 %v1654_v2 }
  0x7c   : > { %2376 = vmatprep.subr.mxu0 %v2511_v1  ;;  %p2451_p12 = pnand %p2450_p11, %p2587_p5  ;;  %p2458_p2 = por %p2457_p1, %p2456_p0 }
  0x7d   : > { %2251 = vmatmul.mubr.f32.gmra.mxu0 %v806_v10  ;;  %v1652_v10 = vld [vmem:[%s3246_s4 + $0x60] sm:$0xff] }
  0x7e   : > { %2331 = vmatmul.mubr.f32.gmra.mxu1 %v1111_v11  ;;  %2253 = vmatprep.mubr.f32.mxu0 %v807_v12  ;;  %v1651_v11 = vld [vmem:[%s3246_s4 + $0x58] sm:$0xff]  ;;  %p2452_p13 = pneg %p2451_p12 }
  0x7f   : > { %2333 = vmatprep.mubr.f32.mxu1 %v1112_v13  ;;  %2377 = vmatpush3.msra.mxu0 %v1653_v3 }
  0x80   : > { %2378 = vmatprep.subr.mxu0 %v2511_v1  ;;  %p2459_p3 = pnand %p2458_p2, %p2452_p13 }
  0x81   : > { %2254 = vmatmul.mubr.f32.gmra.mxu0 %v808_v14 }
  0x82   : > { %2334 = vmatmul.mubr.f32.gmra.mxu1 %v1113_v15  ;;  %2256 = vmatprep.mubr.f32.mxu0 %v809_v16 }
  0x83   : > { %2336 = vmatprep.mubr.f32.mxu1 %v1114_v17  ;;  %2379 = vmatpush3.msra.mxu0 %v1652_v10 }
  0x84   : > { %2380 = vmatprep.subr.mxu0 %v2511_v1 }
  0x85   : > { %2257 = vmatmul.mubr.f32.gmra.mxu0 %v810_v18 }
  0x86   : > { %2337 = vmatmul.mubr.f32.gmra.mxu1 %v1115_v19  ;;  %2259 = vmatprep.mubr.f32.mxu0 %v811_v20  ;;  %v1650_v20 = vld [vmem:[%s3246_s4 + $0x50] sm:$0xff] }
  0x87   : > { %2339 = vmatprep.mubr.f32.mxu1 %v1116_v21  ;;  %2381 = vmatpush3.msra.mxu0 %v1651_v11  ;;  %v1649_v21 = vld [vmem:[%s3246_s4 + $0x48] sm:$0xff] }
  0x88   : > { %2382 = vmatprep.subr.mxu0 %v2511_v1 }
  0x89   : > { %2260 = vmatmul.mubr.f32.gmra.mxu0 %v812_v22 }
  0x8a   : > { %2340 = vmatmul.mubr.f32.gmra.mxu1 %v1117_v23  ;;  %2262 = vmatprep.mubr.f32.mxu0 %v813_v24 }
  0x8b   : > { %2342 = vmatprep.mubr.f32.mxu1 %v1118_v25  ;;  %2383 = vmatpush3.msra.mxu0 %v1650_v20 }
  0x8c   : > { %2384 = vmatprep.subr.mxu0 %v2511_v1 }
  0x8d   : > { %2263 = vmatmul.mubr.f32.gmra.mxu0 %v814_v26 }
  0x8e   : > { %2343 = vmatmul.mubr.f32.gmra.mxu1 %v1119_v27  ;;  %2265 = vmatprep.mubr.f32.mxu0 %v815_v28 }
  0x8f   : > { %2345 = vmatprep.mubr.f32.mxu1 %v1120_v29  ;;  %2385 = vmatpush3.msra.mxu0 %v1649_v21  ;;  %v1648_v29 = vld [vmem:[%s3246_s4 + $0x40] sm:$0xff] }
  0x90   : > { %2386 = vmatprep.subr.mxu0 %v2511_v1 }
  0x91   : > { %2266 = vmatmul.mubr.f32.gmra.mxu0 %v816_v30 }
  0x92   : > { %2346 = vmatmul.mubr.f32.gmra.mxu1 %v1121_v31  ;;  %2268 = vmatprep.mubr.f32.mxu0 %v817_v32 }
  0x93   : > { %2348 = vmatprep.mubr.f32.mxu1 %v1122_v33  ;;  %2387 = vmatpush3.msra.mxu0 %v1648_v29  ;;  %v1647_v33 = vld [vmem:[%s3246_s4 + $0x38] sm:$0xff] }
  0x94   : > { %2388 = vmatprep.subr.mxu0 %v2511_v1 }
  0x95   : > { %2269 = vmatmul.mubr.f32.gmra.mxu0 %v818_v34 }
  0x96   : > { %2349 = vmatmul.mubr.f32.gmra.mxu1 %v1123_v35  ;;  %2271 = vmatprep.mubr.f32.mxu0 %v819_v36 }
  0x97   : > { %2351 = vmatprep.mubr.f32.mxu1 %v1124_v37  ;;  %2389 = vmatpush3.msra.mxu0 %v1647_v33 }
  0x98   : > { %2390 = vmatprep.subr.mxu0 %v2511_v1 }
  0x99   : > { %2272 = vmatmul.mubr.f32.gmra.mxu0 %v820_v38 }
  0x9a   : > { %2352 = vmatmul.mubr.f32.gmra.mxu1 %v1125_v39  ;;  %2274 = vmatprep.mubr.f32.mxu0 %v821_v40  ;;  %v1646_v39 = vld [vmem:[%s3246_s4 + $0x30] sm:$0xff] }
  0x9b   : > { %2354 = vmatprep.mubr.f32.mxu1 %v1126_v41  ;;  %2391 = vmatpush3.msra.mxu0 %v1646_v39 }
  0x9c   : > { %2392 = vmatprep.subr.mxu0 %v2511_v1 }
  0x9d   : > { %2275 = vmatmul.mubr.f32.gmra.mxu0 %v822_v42 }
  0x9e   : > { %2355 = vmatmul.mubr.f32.gmra.mxu1 %v1127_v43  ;;  %2277 = vmatprep.mubr.f32.mxu0 %v823_v44  ;;  %v1645_v43 = vld [vmem:[%s3246_s4 + $0x28] sm:$0xff] }
  0x9f   : > { %2357 = vmatprep.mubr.f32.mxu1 %v1128_v45  ;;  %2393 = vmatpush3.msra.mxu0 %v1645_v43 }
  0xa0   : > { %2394 = vmatprep.subr.mxu0 %v2511_v1 }
  0xa1   : > { %2278 = vmatmul.mubr.f32.gmra.mxu0 %v824_v46 }
  0xa2   : > { %2358 = vmatmul.mubr.f32.gmra.mxu1 %v1129_v47  ;;  %2280 = vmatprep.mubr.f32.mxu0 %v825_v48  ;;  %v1644_v47 = vld [vmem:[%s3246_s4 + $0x20] sm:$0xff] }
  0xa3   : > { %2360 = vmatprep.mubr.f32.mxu1 %v1130_v49  ;;  %2395 = vmatpush3.msra.mxu0 %v1644_v47 }
  0xa4   : > { %2396 = vmatprep.subr.mxu0 %v2511_v1 }
  0xa5   : > { %2281 = vmatmul.mubr.f32.gmra.mxu0 %v826_v50 }
  0xa6   : > { %2361 = vmatmul.mubr.f32.gmra.mxu1 %v1131_v51  ;;  %2283 = vmatprep.mubr.f32.mxu0 %v827_v52  ;;  %v1643_v51 = vld [vmem:[%s3246_s4 + $0x18] sm:$0xff] }
  0xa7   : > { %2363 = vmatprep.mubr.f32.mxu1 %v1132_v53  ;;  %2397 = vmatpush3.msra.mxu0 %v1643_v51  ;;  %v1642_v53 = vld [vmem:[%s3246_s4 + $0x10] sm:$0xff] }
  0xa8   : > { %2398 = vmatprep.subr.mxu0 %v2511_v1 }
  0xa9   : > { %2284 = vmatmul.mubr.f32.gmra.mxu0 %v828_v54 }
  0xaa   : > { %2364 = vmatmul.mubr.f32.gmra.mxu1 %v1133_v55  ;;  %2286 = vmatprep.mubr.f32.mxu0 %v829_v56  ;;  %v1641_v56 = vld [vmem:[%s3246_s4 + $0x8] sm:$0xff] }
  0xab   : > { %2366 = vmatprep.mubr.f32.mxu1 %v1134_v57  ;;  %2399 = vmatpush3.msra.mxu0 %v1642_v53 }
  0xac   : > { %2400 = vmatprep.subr.mxu0 %v2511_v1 }
  0xad   : > { %2287 = vmatmul.mubr.f32.gmra.mxu0 %v830_v58 }
  0xae   : > { %2367 = vmatmul.mubr.f32.gmra.mxu1 %v1135_v59  ;;  %2289 = vmatprep.mubr.f32.mxu0 %v831_v60  ;;  %v1640_v60 = vld [vmem:[%s3246_s4] sm:$0xff] }
  0xaf   : > { %2369 = vmatprep.mubr.f32.mxu1 %v1136_v61  ;;  %2401 = vmatpush3.msra.mxu0 %v1641_v56 }
  0xb0   : > { %2402 = vmatprep.subr.mxu0 %v2511_v1 }
  0xb1   : > { %2290 = vmatmul.mubr.f32.gmra.mxu0 %v832_v62 }
  0xb2   : > { %2370 = vmatmul.mubr.f32.gmra.mxu1 %v1137_v63  ;;  %2404 = vmatprep.mubr.msk.f32.mxu0 %vm2512_vm0, %v2511_v1 }
  0xb3   : > { %2403 = vmatpush3.msra.mxu0 %v1640_v60 }
  0xf5   : > { %v2086_v4 = vpop.f32.mrf.mxu0 }
  0xf6   : > { %v2166_v5 = vpop.f32.mrf.mxu1 }
  0xf7   : > { %v2936_v6 = vadd.f32 %v2166_v5, %v2086_v4  ;;  %v417_v7 = vpop.f32.mrf.mxu0 }
  0xf8   : > { %v642_v8 = vpop.f32.mrf.mxu1 }
  0xf9   : > { %v2938_v9 = vadd.f32 %v642_v8, %v417_v7  ;;  %v2089_v12 = vpop.f32.mrf.mxu0 }
  0xfa   : > { %v2169_v13 = vpop.f32.mrf.mxu1 }
  0xfb   : > { %v2946_v14 = vadd.f32 %v2169_v13, %v2089_v12  ;;  %v427_v15 = vpop.f32.mrf.mxu0 }
  0xfc   : > { %v652_v16 = vpop.f32.mrf.mxu1 }
  0xfd   : > { %v2949_v17 = vadd.f32 %v652_v16, %v427_v15  ;;  %v2092_v18 = vpop.f32.mrf.mxu0 }
  0xfe   : > { %v2172_v19 = vpop.f32.mrf.mxu1 }
  0xff   : > { %v2958_v22 = vadd.f32 %v2172_v19, %v2092_v18  ;;  %v437_v23 = vpop.f32.mrf.mxu0 }
 0x100   : > { %v662_v24 = vpop.f32.mrf.mxu1 }
 0x101   : > { %v2961_v25 = vadd.f32 %v662_v24, %v437_v23  ;;  %v2095_v26 = vpop.f32.mrf.mxu0 }
 0x102   : > { %v2175_v27 = vpop.f32.mrf.mxu1 }
 0x103   : > { %v2964_v28 = vadd.f32 %v2175_v27, %v2095_v26  ;;  %v447_v30 = vpop.f32.mrf.mxu0 }
 0x104   : > { %v672_v31 = vpop.f32.mrf.mxu1 }
 0x105   : > { %v2969_v32 = vadd.f32 %v672_v31, %v447_v30  ;;  %v2098_v34 = vpop.f32.mrf.mxu0 }
 0x106   : > { %v2178_v35 = vpop.f32.mrf.mxu1 }
 0x107   : > { %v2975_v36 = vadd.f32 %v2178_v35, %v2098_v34  ;;  %v457_v37 = vpop.f32.mrf.mxu0 }
 0x108   : > { %v682_v38 = vpop.f32.mrf.mxu1 }
 0x109   : > { %v2981_v40 = vadd.f32 %v682_v38, %v457_v37  ;;  %v2101_v41 = vpop.f32.mrf.mxu0 }
 0x10a   : > { %v2181_v42 = vpop.f32.mrf.mxu1 }
 0x10b   : > { %v2987_v44 = vadd.f32 %v2181_v42, %v2101_v41  ;;  %v467_v45 = vpop.f32.mrf.mxu0 }
 0x10c   : > { %v692_v46 = vpop.f32.mrf.mxu1 }
 0x10d   : > { %v2993_v48 = vadd.f32 %v692_v46, %v467_v45  ;;  %v2104_v49 = vpop.f32.mrf.mxu0 }
 0x10e   : > { %v2184_v50 = vpop.f32.mrf.mxu1 }
 0x10f   : > { %v2999_v52 = vadd.f32 %v2184_v50, %v2104_v49  ;;  %v477_v54 = vpop.f32.mrf.mxu0 }
 0x110   : > { %v702_v55 = vpop.f32.mrf.mxu1 }
 0x111   : > { %v3009_v57 = vadd.f32 %v702_v55, %v477_v54  ;;  %v2107_v58 = vpop.f32.mrf.mxu0 }
 0x112   : > { %v2187_v59 = vpop.f32.mrf.mxu1 }
 0x113   : > { %v3015_v61 = vadd.f32 %v2187_v59, %v2107_v58  ;;  %v487_v62 = vpop.f32.mrf.mxu0 }
 0x114   : > { %v712_v63 = vpop.f32.mrf.mxu1 }
 0x115   : > { %v3018_v0 = vadd.f32 %v712_v63, %v487_v62  ;;  %v2110_v2 = vpop.f32.mrf.mxu0 }
 0x116   : > { %v2190_v3 = vpop.f32.mrf.mxu1 }
 0x117   : > { %v3020_v4 = vadd.f32 %v2190_v3, %v2110_v2  ;;  %v497_v5 = vpop.f32.mrf.mxu0  ;;  %v3058_v2 = vld [vmem:[%s3244_s2] ss:$0 sm:$0xff] }
 0x118   : > { %v722_v7 = vpop.f32.mrf.mxu1 }
 0x119   : > { %v3022_v8 = vadd.f32 %v722_v7, %v497_v5  ;;  %v2113_v10 = vpop.f32.mrf.mxu0 }
 0x11a   : > { %v2193_v11 = vpop.f32.mrf.mxu1 }
 0x11b   : > { %v3024_v12 = vadd.f32 %v2193_v11, %v2113_v10  ;;  %v507_v13 = vpop.f32.mrf.mxu0 }
 0x11c   : > { %v732_v15 = vpop.f32.mrf.mxu1 }
 0x11d   : > { %v3026_v16 = vadd.f32 %v732_v15, %v507_v13  ;;  %v2116_v1 = vpop.f32.mrf.mxu0 }
 0x11e   : > { %v2196_v18 = vpop.f32.mrf.mxu1 }
 0x11f   : > { %v3028_v19 = vadd.f32 %v2196_v18, %v2116_v1  ;;  %v517_v20 = vpop.f32.mrf.mxu0 }
 0x120   : > { %v742_v21 = vpop.f32.mrf.mxu1 }
 0x121   : > { %v3030_v23 = vadd.f32 %v742_v21, %v517_v20  ;;  %v2119_v24 = vpop.f32.mrf.mxu0 }
 0x122   : > { %v2199_v26 = vpop.f32.mrf.mxu1 }
 0x123   : > { %v3032_v27 = vadd.f32 %v2199_v26, %v2119_v24  ;;  %v527_v29 = vpop.f32.mrf.mxu0 }
 0x124   : > { %v752_v30 = vpop.f32.mrf.mxu1 }
 0x125   : > { %v3034_v31 = vadd.f32 %v752_v30, %v527_v29  ;;  %v2122_v33 = vpop.f32.mrf.mxu0 }
 0x126   : > { %v2202_v34 = vpop.f32.mrf.mxu1 }
 0x127   : > { %v3036_v35 = vadd.f32 %v2202_v34, %v2122_v33  ;;  %v537_v37 = vpop.f32.mrf.mxu0 }
 0x128   : > { %v762_v38 = vpop.f32.mrf.mxu1 }
 0x129   : > { %v3038_v39 = vadd.f32 %v762_v38, %v537_v37  ;;  %v2125_v41 = vpop.f32.mrf.mxu0 }
 0x12a   : > { %v2205_v42 = vpop.f32.mrf.mxu1 }
 0x12b   : > { %v3040_v43 = vadd.f32 %v2205_v42, %v2125_v41  ;;  %v547_v45 = vpop.f32.mrf.mxu0 }
 0x12c   : > { %v772_v46 = vpop.f32.mrf.mxu1 }
 0x12d   : > { %v3042_v47 = vadd.f32 %v772_v46, %v547_v45  ;;  %v2128_v49 = vpop.f32.mrf.mxu0 }
 0x12e   : > { %v2208_v50 = vpop.f32.mrf.mxu1 }
 0x12f   : > { %v3044_v51 = vadd.f32 %v2208_v50, %v2128_v49  ;;  %v557_v53 = vpop.f32.mrf.mxu0 }
 0x130   : > { %v782_v54 = vpop.f32.mrf.mxu1 }
 0x131   : > { %v3046_v55 = vpop.f32.mrf.mxu0 }
 0x132   : > { %v3048_v56 = vpop.f32.mrf.mxu1 }
 0x133   : > { %v3050_v58 = vpop.f32.mrf.mxu0 }
 0x134   : > { %v3052_v59 = vpop.f32.mrf.mxu1 }
 0x135   : > { %v2246_v60 = vpop.f32.mrf.mxu0 }
 0x136   : > { %v2326_v62 = vpop.f32.mrf.mxu1  ;;  %v1075_v63 = vadd.f32 %v2246_v60, %v2936_v6  ;;  %v1563_v6 = vld [vmem:[%s3245_s3] sm:$0x7] }
 0x137   : > { %v915_v3 = vpop.f32.mrf.mxu0 }
 0x138   : > { %v1220_v5 = vpop.f32.mrf.mxu1  ;;  %v1380_v7 = vadd.f32 %v2326_v62, %v1075_v63  ;;  %v1074_v10 = vadd.f32 %v915_v3, %v2938_v9  ;;  %v3068_v9 = vrot.slane %v1563_v6, 3 }
 0x139   : > { %v2249_v11 = vpop.f32.mrf.mxu0 }
 0x13a   : > { %v2329_v13 = vpop.f32.mrf.mxu1  ;;  %v1419_v15 = vadd.f32 %v3058_v2, %v1380_v7  ;;  %v1379_v1 = vadd.f32 %v1220_v5, %v1074_v10  ;;  %v1077_v18 = vadd.f32 %v2249_v11, %v2946_v14 }
 0x13b   : > { %v925_v20 = vpop.f32.mrf.mxu0 }
 0x13c   : > { %v1230_v21 = vpop.f32.mrf.mxu1  ;;  %v1418_v24 = vadd.f32 %v3058_v2, %v1379_v1  ;;  %v1382_v26 = vadd.f32 %v2329_v13, %v1077_v18  ;;  %v1076_v29 = vadd.f32 %v925_v20, %v2949_v17  ;;  %v1451_v30 = vmax.f32 %v1419_v15, 0.0 }
 0x13d   : > { %v2252_v33 = vpop.f32.mrf.mxu0 }
 0x13e   : > { %v2332_v34 = vpop.f32.mrf.mxu1  ;;  %v1450_v37 = vmax.f32 %v1418_v24, 0.0  ;;  %v1421_v38 = vadd.f32 %v3058_v2, %v1382_v26  ;;  %v1381_v14 = vadd.f32 %v1230_v21, %v1076_v29  ;;  %v1079_v41 = vadd.f32 %v2252_v33, %v2958_v22 }
 0x13f   : > { %v935_v42 = vpop.f32.mrf.mxu0  ;;  %v3081_v29 = vadd.f32 %v782_v54, %v557_v53  ;;  %v3089_v53 = vadd.f32 %v3048_v56, %v3046_v55 }
 0x140   : > { %v1240_v45 = vpop.f32.mrf.mxu1  ;;  %v1482_v46 = vmax.f32 %v1450_v37, %v1451_v30  ;;  %v1453_v49 = vmax.f32 %v1421_v38, 0.0  ;;  %v1420_v50 = vadd.f32 %v3058_v2, %v1381_v14  ;;  %v1384_v60 = vadd.f32 %v2332_v34, %v1079_v41 }
 0x141   : > { %v1078_v17 = vadd.f32 %v935_v42, %v2961_v25  ;;  %v2255_v62 = vpop.f32.mrf.mxu0 }
 0x142   : > { %v2335_v63 = vpop.f32.mrf.mxu1  ;;  %v1567_v3 = vmul.f32 %v3068_v9, %v1453_v49  ;;  %v1452_v5 = vmax.f32 %v1420_v50, 0.0  ;;  %v1423_v7 = vadd.f32 %v3058_v2, %v1384_v60  ;;  %v1081_v22 = vadd.f32 %v2255_v62, %v2964_v28 }
 0x143   : > { %v1383_v10 = vadd.f32 %v1240_v45, %v1078_v17  ;;  %v945_v11 = vpop.f32.mrf.mxu0  ;;  %v1485_v25 = vsel %vm1484_vm2, %v1453_v49, -inf }
 0x144   : > { %v1250_v13 = vpop.f32.mrf.mxu1  ;;  %v1576_v15 = vsel %vm1575_vm1, %v1567_v3, -inf  ;;  %v1483_v1 = vmax.f32 %v1482_v46, %v1452_v5  ;;  %v1080_v18 = vadd.f32 %v945_v11, %v2969_v32  ;;  %v1386_v21 = vadd.f32 %v2335_v63, %v1081_v22 }
 0x145   : > { %v1577_v6 = vrot.slane %v1576_v15, 4  ;;  %v1422_v20 = vadd.f32 %v3058_v2, %v1383_v10  ;;  %v2258_v24 = vpop.f32.mrf.mxu0  ;;  %v1455_v37 = vmax.f32 %v1423_v7, 0.0 }
 0x146   : > { %v2338_v26 = vpop.f32.mrf.mxu1  ;;  %v1486_v30 = vmax.f32 %v1483_v1, %v1485_v25  ;;  %v1385_v33 = vadd.f32 %v1250_v13, %v1080_v18  ;;  %v1083_v28 = vadd.f32 %v2258_v24, %v2975_v36  ;;  %v1425_v14 = vadd.f32 %v3058_v2, %v1386_v21 }
 0x147   : > { %v1578_v34 = vmax.f32 %v1576_v15, %v1577_v6  ;;  %v1454_v38 = vmax.f32 %v1422_v20, 0.0  ;;  %v955_v32 = vpop.f32.mrf.mxu0 }
 0x148   : > { %v1260_v41 = vpop.f32.mrf.mxu1  ;;  %v1487_v42 = vrot.slane %v1486_v30, 4  ;;  %v1424_v45 = vadd.f32 %v3058_v2, %v1385_v33  ;;  %v1388_v46 = vadd.f32 %v2338_v26, %v1083_v28  ;;  %v1082_v49 = vadd.f32 %v955_v32, %v2981_v40 }
 0x149   : > { %v1579_v54 = vrot.slane %v1578_v34, 2  ;;  %v1493_v50 = vmax.f32 %v1454_v38, %v1455_v37  ;;  %v1457_v36 = vmax.f32 %v1425_v14, 0.0  ;;  %v2261_v60 = vpop.f32.mrf.mxu0 }
 0x14a   : > { %v2341_v17 = vpop.f32.mrf.mxu1  ;;  %v1488_v62 = vmax.f32 %v1486_v30, %v1487_v42  ;;  %v1456_v63 = vmax.f32 %v1424_v45, 0.0  ;;  %v1427_v3 = vadd.f32 %v3058_v2, %v1388_v46  ;;  %v1387_v5 = vadd.f32 %v1260_v41, %v1082_v49 }
 0x14b   : > { %v1580_v7 = vmax.f32 %v1578_v34, %v1579_v54  ;;  %v1495_v10 = vsel %vm1484_vm2, %v1457_v36, -inf  ;;  %v1568_v22 = vmul.f32 %v3068_v9, %v1457_v36  ;;  %v1085_v40 = vadd.f32 %v2261_v60, %v2987_v44  ;;  %v965_v11 = vpop.f32.mrf.mxu0 }
 0x14c   : > { %v1270_v55 = vpop.f32.mrf.mxu1  ;;  %v1489_v56 = vrot.slane %v1488_v62, 2  ;;  %v1494_v13 = vmax.f32 %v1493_v50, %v1456_v63  ;;  %v1459_v15 = vmax.f32 %v1427_v3, 0.0  ;;  %v1426_v1 = vadd.f32 %v3058_v2, %v1387_v5 }
 0x14d   : > { %v1581_v18 = vrot.slane %v1580_v7, 1  ;;  %v1583_v25 = vsel %vm1575_vm1, %v1568_v22, -inf  ;;  %v1390_v6 = vadd.f32 %v2341_v17, %v1085_v40  ;;  %v1084_v20 = vadd.f32 %v965_v11, %v2993_v48  ;;  %v2264_v21 = vpop.f32.mrf.mxu0 }
 0x14e   : > { %v2344_v24 = vpop.f32.mrf.mxu1  ;;  %v1490_v26 = vmax.f32 %v1488_v62, %v1489_v56  ;;  %v1584_v30 = vrot.slane %v1583_v25, 4  ;;  %v1496_v33 = vmax.f32 %v1494_v13, %v1495_v10  ;;  %v1458_v28 = vmax.f32 %v1426_v1, 0.0 }
 0x14f   : > { %v3098_v44 = vmax.f32 %v1580_v7, %v1581_v18  ;;  %v1429_v34 = vadd.f32 %v3058_v2, %v1390_v6  ;;  %v1389_v37 = vadd.f32 %v1270_v55, %v1084_v20  ;;  %v1087_v38 = vadd.f32 %v2264_v21, %v2999_v52  ;;  %v975_v14 = vpop.f32.mrf.mxu0 }
 0x150   : > { %v1280_v32 = vpop.f32.mrf.mxu1  ;;  %v1491_v41 = vrot.slane %v1490_v26, 1  ;;  %v1585_v42 = vmax.f32 %v1583_v25, %v1584_v30  ;;  %v1497_v45 = vrot.slane %v1496_v33, 4  ;;  %v1503_v46 = vmax.f32 %v1458_v28, %v1459_v15 }
 0x151   : > { %v1461_v48 = vmax.f32 %v1429_v34, 0.0  ;;  %v1428_v49 = vadd.f32 %v3058_v2, %v1389_v37  ;;  %v1392_v54 = vadd.f32 %v2344_v24, %v1087_v38  ;;  %v1086_v50 = vadd.f32 %v975_v14, %v3009_v57  ;;  %v2267_v36 = vpop.f32.mrf.mxu0 }
 0x152   : > { %v2347_v60 = vpop.f32.mrf.mxu1  ;;  %v3104_v17 = vmax.f32 %v1490_v26, %v1491_v41  ;;  %v1586_v62 = vrot.slane %v1585_v42, 2  ;;  %v1498_v63 = vmax.f32 %v1496_v33, %v1497_v45  ;;  %v1089_v52 = vadd.f32 %v2267_v36, %v3015_v61 }
 0x153   : > { %v1505_v3 = vsel %vm1484_vm2, %v1461_v48, -inf  ;;  %v1569_v5 = vmul.f32 %v3068_v9, %v1461_v48  ;;  %v1460_v7 = vmax.f32 %v1428_v49, 0.0  ;;  %v1431_v10 = vadd.f32 %v3058_v2, %v1392_v54  ;;  %v985_v22 = vpop.f32.mrf.mxu0 }
 0x154   : > { %v1290_v40 = vpop.f32.mrf.mxu1  ;;  %v1632_v57 = vmax.f32 %v3104_v17, %v3098_v44  ;;  %v1587_v11 = vmax.f32 %v1585_v42, %v1586_v62  ;;  %v1499_v55 = vrot.slane %v1498_v63, 2  ;;  %v1391_v56 = vadd.f32 %v1280_v32, %v1086_v50 }
 0x155   : > { %v1590_v13 = vsel %vm1575_vm1, %v1569_v5, -inf  ;;  %v1504_v15 = vmax.f32 %v1503_v46, %v1460_v7  ;;  %v1463_v1 = vmax.f32 %v1431_v10, 0.0  ;;  %v1394_v61 = vadd.f32 %v2347_v60, %v1089_v52  ;;  %v2270_v18 = vpop.f32.mrf.mxu0 }
 0x156   : > { %v2350_v25 = vpop.f32.mrf.mxu1  ;;  %v1588_v6 = vrot.slane %v1587_v11, 1  ;;  %v1500_v20 = vmax.f32 %v1498_v63, %v1499_v55  ;;  %v1591_v21 = vrot.slane %v1590_v13, 4  ;;  %v1430_v24 = vadd.f32 %v3058_v2, %v1391_v56 }
 0x157   : > { %v1506_v26 = vmax.f32 %v1504_v15, %v1505_v3  ;;  %v1433_v30 = vadd.f32 %v3058_v2, %v1394_v61  ;;  %v1088_v33 = vadd.f32 %v985_v22, %v3018_v0  ;;  %v1091_v28 = vadd.f32 %v2270_v18, %v3020_v4  ;;  %v995_v34 = vpop.f32.mrf.mxu0 }
 0x158   : > { %v1300_v37 = vpop.f32.mrf.mxu1  ;;  %v3117_v38 = vmax.f32 %v1587_v11, %v1588_v6  ;;  %v1501_v14 = vrot.slane %v1500_v20, 1  ;;  %v1592_v32 = vmax.f32 %v1590_v13, %v1591_v21  ;;  %v1462_v41 = vmax.f32 %v1430_v24, 0.0 }
 0x159   : > { %v1507_v42 = vrot.slane %v1506_v26, 4  ;;  %v1465_v45 = vmax.f32 %v1433_v30, 0.0  ;;  %v1393_v46 = vadd.f32 %v1290_v40, %v1088_v33  ;;  %v1396_v48 = vadd.f32 %v2350_v25, %v1091_v28  ;;  %v2273_v49 = vpop.f32.mrf.mxu0 }
 0x15a   : > { %v2353_v54 = vpop.f32.mrf.mxu1  ;;  %v3119_v50 = vmax.f32 %v1500_v20, %v1501_v14  ;;  %v1593_v36 = vrot.slane %v1592_v32, 2  ;;  %v1513_v60 = vmax.f32 %v1462_v41, %v1463_v1  ;;  %v1090_v0 = vadd.f32 %v995_v34, %v3022_v8 }
 0x15b   : > { %v1508_v4 = vmax.f32 %v1506_v26, %v1507_v42  ;;  %v1515_v62 = vsel %vm1484_vm2, %v1465_v45, -inf  ;;  %v1570_v63 = vmul.f32 %v3068_v9, %v1465_v45  ;;  %v1432_v52 = vadd.f32 %v3058_v2, %v1393_v46  ;;  %v1005_v3 = vpop.f32.mrf.mxu0 }
 0x15c   : > { %v1310_v5 = vpop.f32.mrf.mxu1  ;;  %v1633_v7 = vmax.f32 %v3119_v50, %v3117_v38  ;;  %v1594_v10 = vmax.f32 %v1592_v32, %v1593_v36  ;;  %v1435_v22 = vadd.f32 %v3058_v2, %v1396_v48  ;;  %v1395_v40 = vadd.f32 %v1300_v37, %v1090_v0 }
 0x15d   : > { %v1509_v11 = vrot.slane %v1508_v4, 2  ;;  %v1597_v55 = vsel %vm1575_vm1, %v1570_v63, -inf  ;;  %v1464_v8 = vmax.f32 %v1432_v52, 0.0  ;;  %v1093_v56 = vadd.f32 %v2273_v49, %v3024_v12  ;;  %v2276_v13 = vpop.f32.mrf.mxu0 }
 0x15e   : > { %v2356_v15 = vpop.f32.mrf.mxu1  ;;  %v1595_v1 = vrot.slane %v1594_v10, 1  ;;  %v1598_v61 = vrot.slane %v1597_v55, 4  ;;  %v1467_v18 = vmax.f32 %v1435_v22, 0.0  ;;  %v1434_v25 = vadd.f32 %v3058_v2, %v1395_v40 }
 0x15f   : > { %v1510_v6 = vmax.f32 %v1508_v4, %v1509_v11  ;;  %v1514_v20 = vmax.f32 %v1513_v60, %v1464_v8  ;;  %v1398_v21 = vadd.f32 %v2353_v54, %v1093_v56  ;;  %v1092_v24 = vadd.f32 %v1005_v3, %v3026_v16  ;;  %v1015_v26 = vpop.f32.mrf.mxu0 }
 0x160   : > { %v1320_v30 = vpop.f32.mrf.mxu1  ;;  %v3132_v33 = vmax.f32 %v1594_v10, %v1595_v1  ;;  %v1599_v28 = vmax.f32 %v1597_v55, %v1598_v61  ;;  %v1466_v34 = vmax.f32 %v1434_v25, 0.0  ;;  %v1095_v12 = vadd.f32 %v2276_v13, %v3028_v19 }
 0x161   : > { %v1511_v37 = vrot.slane %v1510_v6, 1  ;;  %v1516_v14 = vmax.f32 %v1514_v20, %v1515_v62  ;;  %v1437_v32 = vadd.f32 %v3058_v2, %v1398_v21  ;;  %v1397_v41 = vadd.f32 %v1310_v5, %v1092_v24  ;;  %v2279_v42 = vpop.f32.mrf.mxu0 }
 0x162   : > { %v2359_v45 = vpop.f32.mrf.mxu1  ;;  %v1600_v46 = vrot.slane %v1599_v28, 2  ;;  %v1523_v48 = vmax.f32 %v1466_v34, %v1467_v18  ;;  %v1400_v49 = vadd.f32 %v2356_v15, %v1095_v12  ;;  %v1094_v16 = vadd.f32 %v1015_v26, %v3030_v23 }
 0x163   : > { %v3137_v54 = vmax.f32 %v1510_v6, %v1511_v37  ;;  %v1517_v36 = vrot.slane %v1516_v14, 4  ;;  %v1469_v60 = vmax.f32 %v1437_v32, 0.0  ;;  %v1436_v0 = vadd.f32 %v3058_v2, %v1397_v41  ;;  %v1025_v4 = vpop.f32.mrf.mxu0 }
 0x164   : > { %v1330_v19 = vpop.f32.mrf.mxu1  ;;  %v1601_v63 = vmax.f32 %v1599_v28, %v1600_v46  ;;  %v1439_v62 = vadd.f32 %v3058_v2, %v1400_v49  ;;  %v1399_v52 = vadd.f32 %v1320_v30, %v1094_v16  ;;  %v1097_v3 = vadd.f32 %v2279_v42, %v3032_v27 }
 0x165   : > { %v1634_v5 = vmax.f32 %v3137_v54, %v3132_v33  ;;  %v1518_v10 = vmax.f32 %v1516_v14, %v1517_v36  ;;  %v1525_v23 = vsel %vm1484_vm2, %v1469_v60, -inf  ;;  %v1571_v22 = vmul.f32 %v3068_v9, %v1469_v60  ;;  %v2282_v40 = vpop.f32.mrf.mxu0 }
 0x166   : > { %v2362_v11 = vpop.f32.mrf.mxu1  ;;  %v1602_v55 = vrot.slane %v1601_v63, 1  ;;  %v1468_v8 = vmax.f32 %v1436_v0, 0.0  ;;  %v1471_v56 = vmax.f32 %v1439_v62, 0.0  ;;  %v1438_v13 = vadd.f32 %v3058_v2, %v1399_v52 }
 0x167   : > { %v1519_v15 = vrot.slane %v1518_v10, 2  ;;  %v1604_v1 = vsel %vm1575_vm1, %v1571_v22, -inf  ;;  %v1402_v61 = vadd.f32 %v2359_v45, %v1097_v3  ;;  %v1096_v27 = vadd.f32 %v1025_v4, %v3034_v31  ;;  %v1035_v18 = vpop.f32.mrf.mxu0 }
 0x168   : > { %v1340_v25 = vpop.f32.mrf.mxu1  ;;  %v3149_v6 = vmax.f32 %v1601_v63, %v1602_v55  ;;  %v1605_v20 = vrot.slane %v1604_v1, 4  ;;  %v1524_v21 = vmax.f32 %v1523_v48, %v1468_v8  ;;  %v1470_v24 = vmax.f32 %v1438_v13, 0.0 }
 0x169   : > { %v1520_v26 = vmax.f32 %v1518_v10, %v1519_v15  ;;  %v1441_v30 = vadd.f32 %v3058_v2, %v1402_v61  ;;  %v1401_v28 = vadd.f32 %v1330_v19, %v1096_v27  ;;  %v1099_v34 = vadd.f32 %v2282_v40, %v3036_v35  ;;  %v2285_v12 = vpop.f32.mrf.mxu0 }
 0x16a   : > { %v2365_v37 = vpop.f32.mrf.mxu1  ;;  %v1606_v14 = vmax.f32 %v1604_v1, %v1605_v20  ;;  %v1526_v32 = vmax.f32 %v1524_v21, %v1525_v23  ;;  %v1533_v41 = vmax.f32 %v1470_v24, %v1471_v56  ;;  %v1098_v31 = vadd.f32 %v1035_v18, %v3038_v39 }
 0x16b   : > { %v1521_v42 = vrot.slane %v1520_v26, 1  ;;  %v1473_v45 = vmax.f32 %v1441_v30, 0.0  ;;  %v1440_v46 = vadd.f32 %v3058_v2, %v1401_v28  ;;  %v1404_v49 = vadd.f32 %v2362_v11, %v1099_v34  ;;  %v1045_v48 = vpop.f32.mrf.mxu0 }
 0x16c   : > { %v1350_v16 = vpop.f32.mrf.mxu1  ;;  %v1607_v36 = vrot.slane %v1606_v14, 2  ;;  %v1527_v60 = vrot.slane %v1526_v32, 4  ;;  %v1403_v0 = vadd.f32 %v1340_v25, %v1098_v31  ;;  %v1101_v4 = vadd.f32 %v2285_v12, %v3040_v43 }
 0x16d   : > { %v3156_v35 = vmax.f32 %v1520_v26, %v1521_v42  ;;  %v1535_v19 = vsel %vm1484_vm2, %v1473_v45, -inf  ;;  %v1572_v63 = vmul.f32 %v3068_v9, %v1473_v45  ;;  %v1472_v62 = vmax.f32 %v1440_v46, 0.0  ;;  %v2288_v39 = vpop.f32.mrf.mxu0 }
 0x16e   : > { %v1608_v52 = vmax.f32 %v1606_v14, %v1607_v36  ;;  %v1528_v3 = vmax.f32 %v1526_v32, %v1527_v60  ;;  %v1443_v10 = vadd.f32 %v3058_v2, %v1404_v49  ;;  %v1442_v23 = vadd.f32 %v3058_v2, %v1403_v0  ;;  %v2368_v55 = vpop.f32.mrf.mxu1 }
 0x16f   : > { %v1635_v22 = vmax.f32 %v3156_v35, %v3149_v6  ;;  %v1611_v40 = vsel %vm1575_vm1, %v1572_v63, -inf  ;;  %v1534_v43 = vmax.f32 %v1533_v41, %v1472_v62  ;;  %v1406_v11 = vadd.f32 %v2365_v37, %v1101_v4  ;;  %v1055_v8 = vpop.f32.mrf.mxu0 }
 0x170   : > { %v1609_v56 = vrot.slane %v1608_v52, 1  ;;  %v1529_v13 = vrot.slane %v1528_v3, 2  ;;  %v1612_v15 = vrot.slane %v1611_v40, 4  ;;  %v1475_v1 = vmax.f32 %v1443_v10, 0.0  ;;  %v1360_v37 = vpop.f32.mrf.mxu1 }
 0x171   : > { %v1536_v61 = vmax.f32 %v1534_v43, %v1535_v19  ;;  %v1474_v27 = vmax.f32 %v1442_v23, 0.0  ;;  %v1445_v18 = vadd.f32 %v3058_v2, %v1406_v11  ;;  %v1100_v25 = vadd.f32 %v1045_v48, %v3042_v47  ;;  %v2291_v14 = vpop.f32.mrf.mxu0 }
 0x172   : > { %v793_v20 = vadd.f32 %v3052_v59, %v3050_v58  ;;  %v1530_v21 = vmax.f32 %v1528_v3, %v1529_v13  ;;  %v1613_v24 = vmax.f32 %v1611_v40, %v1612_v15  ;;  %v1103_v26 = vadd.f32 %v2288_v39, %v3044_v51  ;;  %v2371_v4 = vpop.f32.mrf.mxu1 }
 0x173   : > { %v1537_v30 = vrot.slane %v1536_v61, 4  ;;  %v1543_v28 = vmax.f32 %v1474_v27, %v1475_v1  ;;  %v1477_v34 = vmax.f32 %v1445_v18, 0.0  ;;  %v1405_v12 = vadd.f32 %v1350_v16, %v1100_v25 }
 0x174   : > { %v1531_v32 = vrot.slane %v1530_v21, 1  ;;  %v1614_v41 = vrot.slane %v1613_v24, 2  ;;  %v1408_v31 = vadd.f32 %v2368_v55, %v1103_v26  ;;  %v1102_v47 = vadd.f32 %v1055_v8, %v3081_v29  ;;  %v1065_v29 = vpop.f32.mrf.mxu0  ;;  %v1370_v15 = vpop.f32.mrf.mxu1 }
 0x175   : > { %v1610_v42 = vmax.f32 %v1608_v52, %v1609_v56  ;;  %v1538_v45 = vmax.f32 %v1536_v61, %v1537_v30  ;;  %v1573_v58 = vmul.f32 %v3068_v9, %v1477_v34  ;;  %v1444_v59 = vadd.f32 %v3058_v2, %v1405_v12 }
 0x176   : > { %v1532_v51 = vmax.f32 %v1530_v21, %v1531_v32  ;;  %v1615_v46 = vmax.f32 %v1613_v24, %v1614_v41  ;;  %v1447_v49 = vadd.f32 %v3058_v2, %v1408_v31  ;;  %v1407_v48 = vadd.f32 %v1360_v37, %v1102_v47 }
 0x177   : > { %v1539_v16 = vrot.slane %v1538_v45, 2  ;;  %v1618_v36 = vsel %vm1575_vm1, %v1573_v58, -inf  ;;  %v1476_v60 = vmax.f32 %v1444_v59, 0.0  ;;  %v1105_v0 = vadd.f32 %v2291_v14, %v3089_v53 }
 0x178   : > { %v1636_v19 = vmax.f32 %v1532_v51, %v1610_v42  ;;  %v1616_v63 = vrot.slane %v1615_v46, 1  ;;  %v1545_v62 = vsel %vm1484_vm2, %v1477_v34, -inf  ;;  %v1619_v39 = vrot.slane %v1618_v36, 4 }
 0x179   : > { %v1540_v52 = vmax.f32 %v1538_v45, %v1539_v16  ;;  %v1544_v3 = vmax.f32 %v1543_v28, %v1476_v60  ;;  %v1446_v10 = vadd.f32 %v3058_v2, %v1407_v48  ;;  %v1410_v23 = vadd.f32 %v2371_v4, %v1105_v0  ;;  %v1838_v60 = vld [vmem:[%s3247_s5] ss:$0 sm:$0xff] }
 0x17a   : > { %v1620_v40 = vmax.f32 %v1618_v36, %v1619_v39  ;;  %v1479_v43 = vmax.f32 %v1447_v49, 0.0  ;;  %v1104_v11 = vadd.f32 %v1065_v29, %v793_v20  ;;  %v1672_v53 = vsel %vm1671_vm3, %v1633_v7, %v1632_v57 }
 0x17b   : > { %v1541_v55 = vrot.slane %v1540_v52, 1  ;;  %v1546_v8 = vmax.f32 %v1544_v3, %v1545_v62  ;;  %v1478_v56 = vmax.f32 %v1446_v10, 0.0  ;;  %v1449_v13 = vadd.f32 %v3058_v2, %v1410_v23 }
 0x17c   : > { %v1617_v1 = vmax.f32 %v1615_v46, %v1616_v63  ;;  %v1621_v61 = vrot.slane %v1620_v40, 2  ;;  %v1409_v27 = vadd.f32 %v1370_v15, %v1104_v11  ;;  %v1674_v18 = vsel %vm1673_vm4, %v1634_v5, %v1672_v53 }
 0x17d   : > { %v1542_v44 = vmax.f32 %v1540_v52, %v1541_v55  ;;  %v1547_v17 = vrot.slane %v1546_v8, 4  ;;  %v1553_v25 = vmax.f32 %v1478_v56, %v1479_v43  ;;  %v1481_v38 = vmax.f32 %v1449_v13, 0.0 }
 0x17e   : > { %v1448_v57 = vadd.f32 %v3058_v2, %v1409_v27  ;;  %v1676_v50 = vsel %vm1675_vm5, %v1635_v22, %v1674_v18  ;;  %v1622_v7 = vmax.f32 %v1620_v40, %v1621_v61 }
 0x17f   : > { %v1548_v20 = vmax.f32 %v1546_v8, %v1547_v17  ;;  %v1574_v21 = vmul.f32 %v3068_v9, %v1481_v38  ;;  %v1637_v24 = vmax.f32 %v1542_v44, %v1617_v1  ;;  %v1678_v54 = vsel %vm1677_vm6, %v1636_v19, %v1676_v50 }
 0x180   : > { %v1480_v33 = vmax.f32 %v1448_v57, 0.0  ;;  %v1623_v34 = vrot.slane %v1622_v7, 1  ;;  %v1555_v6 = vsel %vm1484_vm2, %v1481_v38, -inf }
 0x181   : > { %v1549_v5 = vrot.slane %v1548_v20, 2  ;;  %v1625_v26 = vsel %vm1575_vm1, %v1574_v21, -inf  ;;  %v1680_v30 = vsel %vm1679_vm7, %v1637_v24, %v1678_v54 }
 0x182   : > { %v1626_v28 = vrot.slane %v1625_v26, 4  ;;  %v1554_v2 = vmax.f32 %v1553_v25, %v1480_v33  ;;  %v1624_v9 = vmax.f32 %v1622_v7, %v1623_v34 }
 0x183   : > { %v1550_v12 = vmax.f32 %v1548_v20, %v1549_v5 }
 0x184   : > { %v1627_v35 = vmax.f32 %v1625_v26, %v1626_v28  ;;  %v1556_v22 = vmax.f32 %v1554_v2, %v1555_v6 }
 0x185   : > { %v1551_v37 = vrot.slane %v1550_v12, 1 }
 0x186   : > { %v1628_v14 = vrot.slane %v1627_v35, 2  ;;  %v1557_v32 = vrot.slane %v1556_v22, 4 }
 0x187   : > { %v1552_v41 = vmax.f32 %v1550_v12, %v1551_v37 }
 0x188   : > { %v1629_v31 = vmax.f32 %v1627_v35, %v1628_v14  ;;  %v1558_v47 = vmax.f32 %v1556_v22, %v1557_v32 }
 0x189   : > { %v1638_v42 = vmax.f32 %v1552_v41, %v1624_v9 }
 0x18a   : > { %v1559_v45 = vrot.slane %v1558_v47, 2  ;;  %v1630_v59 = vrot.slane %v1629_v31, 1 }
 0x18b   : > { %v1682_v58 = vsel %vm1681_vm8, %v1638_v42, %v1680_v30 }
 0x18c   : > { %v1560_v51 = vmax.f32 %v1558_v47, %v1559_v45  ;;  %v1631_v49 = vmax.f32 %v1629_v31, %v1630_v59 }
 0x18e   : > { %v1561_v46 = vrot.slane %v1560_v51, 1 }
 0x190   : > { %v1562_v48 = vmax.f32 %v1560_v51, %v1561_v46 }
 0x192   : > { %v1639_v16 = vmax.f32 %v1562_v48, %v1631_v49 }
 0x194   : > { %v1684_v36 = vsel %vm1683_vm9, %v1639_v16, %v1682_v58 }
 0x195   : > { %2405 = vmatmul.mubr.f32.vlgmr.msra.gmra.mxu0 %v1684_v36 }
 0x255   : > { %v1752_v0 = vpop.f32.mrf.mxu0 }
 0x256   : > { %v1753_v4 = vadd.f32 %v1838_v60, %v1752_v0 }
 0x257   : > { %v2406_v29 = vpop.f32.mrf.mxu0 }
 0x258   : > { %1756 = vst [vmem:[%s247_s9] sm:$0xff] %v1753_v4 }
 0x259   : > { %2462 = shalt.err (!%p2459_p3)
}
 0x25a   : > { %s2463_s19 = scalar_lea.hbm %s3207_s12, 128  ;;  %s2467_s20 = scalar_lea.hbm %s3248_s6, 256 }
 0x25b   : > { %p2464_p4 = scmp.ne.s32.totalorder %s3207_s12, %s2463_s19  ;;  %p2468_p9 = scmp.lt.s32.totalorder %s3207_s12, %s3248_s6 }
 0x25c   : > { %p2469_p10 = scmp.lt.s32.totalorder %s2467_s20, %s2463_s19 }
 0x25d   : > { %p2465_p7 = pnand %p2464_p4, %p2587_p5 }
 0x25e   : > { %p2470_p11 = por %p2469_p10, %p2468_p9 }
 0x25f   : > { %p2466_p8 = pneg %p2465_p7 }
 0x261   : > { %p2471_p12 = pnand %p2470_p11, %p2466_p8 }
 0x263   : > { %2474 = shalt.err (!%p2471_p12)
}
 0x264   : > { %2408 = dma.vmem_to_hbm [thread:$0]  (%p2587_p5), %s1772_s10, 128, %s3207_s12, %s1758_s13  }
 0x265 PF: > { %p2414_p13 = scmp.ge.s32.totalorder %s2509_s24, 2  ;;  %s1783_s9 = sand.u32 1, %s2497_s21  }
 0x266   : > { %s1784_s28 = scalar_lea.sflag [#allocation3], %s1783_s9 }
 0x267   : > { %p2411_p0 = pnand %p2414_p13, %p2591_p6 }
 0x269   : > { %p2412_p1 = pneg %p2411_p0 }
 0x26b   : > { %2492 = dma.done.wait (%p2412_p1), %s1784_s28, 128  }
 0x26c   : > { %2494 = vsyncadd (%p2412_p1), %s1784_s28, 4294967168  ;;  %p16_p2 = scmp.ge.s32.totalorder %s2574_s27, 4   ;;  %s3251_s21 = smov %s2501_s22 }
 0x26d   : > { %s3252_s22 = smov %s2505_s23  ;;  %s3253_s23 = smov %s2585_s30 }
 0x26e   : > { %s3254_s24 = smov %s2574_s27  ;;  %18 = sbr.rel (!%p16_p2) target bundleno = 3 (0x3), region = 79 }
 0x273   :  { %1789 = vsyncpa [#allocation3], 1 }
 0x274   :  { %1791 = vsyncpa [#allocation3 + $0x1], 1 }

</bundles_post_ra>
